<compile_context>
chip_gen: v6e
topology: v6e:2x2x1
jax: 0.10.0
libtpu: 0.0.40
codegen_flags: <defaults>
</compile_context>

<pallas_src>
import numpy as np
import jax
import jax.numpy as jnp
from jax.experimental import pallas as pl
from jax.experimental.pallas import tpu as pltpu

# ------------------------- configuration (module __init__ args) -------------------------
B = 8                       # batch (small demo size; scales to 128+ with no kernel changes)
NUM_OUTPUTS = 4             # num_outputs (total joints)
HIERARCHY = [[0, 1], [2, 3]]
BASE_HIDDEN = 64            # base_hidden_size
DEC_HIDDEN = 32             # decoder_hidden_size
MOD_HIDDEN = 32             # module_hidden_size
BASE_STATE_LEN = 16
N_LIMBS = len(HIERARCHY)                 # 2 sub-modules (limbs)
NUM_MODULES = len(HIERARCHY[0])          # 2 shared controller modules (per-joint within a limb)
SPLICE = BASE_HIDDEN // N_LIMBS          # 32 : splice_output_size
JPV = 2 * NUM_OUTPUTS                    # 8  : joint pos/vel columns of obs
OBS_DIM = BASE_STATE_LEN + JPV           # 24
assert DEC_HIDDEN == MOD_HIDDEN
FUSED = NUM_MODULES * MOD_HIDDEN         # 64 : lane-fused hidden width (both modules)

# --------------------- packed weight slab layout (modules fused in lanes) ---------------
R_W1A = 0                              # [SPLICE, FUSED]   W1a of both modules, side by side
R_W1B = R_W1A + SPLICE                 # [FUSED, FUSED]    block-diag(W1b[0], W1b[1])
R_W2H = R_W1B + FUSED                  # [FUSED, FUSED]    block-diag(W2h[0], W2h[1])
R_W2B = R_W2H + FUSED                  # [FUSED, FUSED]    block-diag(W2b[0], W2b[1])
R_WC = R_W2B + FUSED                   # [FUSED, FUSED]    col m = [0..W2c[m]..0] (final proj)
R_WOBS = R_WC + FUSED                  # [N_LIMBS*JPV, FUSED]  per-limb obs weights (K=8 dot)
R_BIAS = R_WOBS + N_LIMBS * JPV        # [8, FUSED]        rows: b1a,b1b,b2a,b2b,bc,pad
SLAB_ROWS = R_BIAS + 8                 # 312 (multiple of 8)
assert R_BIAS % 8 == 0 and SLAB_ROWS % 8 == 0


# ------------------------------------ Pallas kernel -------------------------------------
def low_policy_kernel(x_ref, obs_ref, slab_ref, mean_ref):
    b = x_ref.shape[0]

    def dot(a, w):
        # MXU is ~idle at these shapes; HIGHEST precision (fp32 contraction) is free.
        return jnp.dot(a, w, precision=jax.lax.Precision.HIGHEST,
                       preferred_element_type=jnp.float32)

    x = x_ref[...]                                       # [B, BASE_HIDDEN]
    jpv = obs_ref[:, BASE_STATE_LEN:]                    # [B, JPV] joint pos/vel

    # Both limbs stacked along batch: rows [p*b:(p+1)*b] hold limb p's splice of x.
    x_all = jnp.concatenate(
        [x[:, p * SPLICE:(p + 1) * SPLICE] for p in range(N_LIMBS)], axis=0)   # [2B, SPLICE]

    # Static-offset slices of the single packed weight slab.
    w1a = slab_ref[R_W1A:R_W1A + SPLICE, :]
    w1b = slab_ref[R_W1B:R_W1B + FUSED, :]
    w2h = slab_ref[R_W2H:R_W2H + FUSED, :]
    w2b = slab_ref[R_W2B:R_W2B + FUSED, :]
    wc = slab_ref[R_WC:R_WC + FUSED, :]
    biases = slab_ref[R_BIAS:R_BIAS + 8, :]              # one aligned 8-row tile
    b1a, b1b, b2a, b2b, bc = (biases[0:1, :], biases[1:2, :], biases[2:3, :],
                              biases[3:4, :], biases[4:5, :])

    # first_layer (MLPDecoder): Linear+tanh, Linear+tanh — both modules fused in lanes,
    # both limbs in sublanes.
    h = jnp.tanh(dot(x_all, w1a) + b1a)                  # [2B, FUSED]
    h = jnp.tanh(dot(h, w1b) + b1b)                      # [2B, FUSED]

    # IndexSelect(joint pos/vel) contribution on the idle MXU: one K=8 push per limb
    # (replaces single-lane gathers + broadcast FMAs of the previous version).
    obs_term = jnp.concatenate(
        [dot(jpv, slab_ref[R_WOBS + p * JPV:R_WOBS + (p + 1) * JPV, :])
         for p in range(N_LIMBS)], axis=0)               # [2B, FUSED]

    # MLPDecoderWithObs (merge_mode='concat'): Linear+tanh, Linear+tanh, Linear(->1/module).
    z = jnp.tanh(dot(h, w2h) + obs_term + b2a)           # [2B, FUSED]
    z = jnp.tanh(dot(z, w2b) + b2b)                      # [2B, FUSED]
    mw = dot(z, wc) + bc                                 # [2B, FUSED]; cols 0..1 = module means

    # Joint order j = NUM_MODULES*p + m  ->  cols 0:2 of each limb row-block, lane concat.
    mean_ref[...] = jnp.concatenate(
        [mw[p * b:(p + 1) * b, 0:NUM_MODULES] for p in range(N_LIMBS)], axis=-1)   # [B, 4]


@jax.jit
def low_policy_forward(x, obs, slab, std_row):
    """x: [B, BASE_HIDDEN], obs: [B, OBS_DIM], slab: [SLAB_ROWS, FUSED],
    std_row: [1, NUM_OUTPUTS] (precomputed, input-independent).
    Returns (action_mean [B,4], action_std [B,4])."""
    vmem = pl.BlockSpec(memory_space=pltpu.MemorySpace.VMEM)
    mean = pl.pallas_call(
        low_policy_kernel,
        out_shape=jax.ShapeDtypeStruct((x.shape[0], NUM_OUTPUTS), jnp.float32),
        in_specs=[vmem, vmem, vmem],
        out_specs=vmem,
        # NOTE: grid-less on purpose (problem < 100 KB). For large B, add a batch-block grid
        # axis + dimension_semantics=("parallel",) so both v7x TensorCores are used.
    )(x, obs, slab)
    std = jnp.broadcast_to(std_row, (x.shape[0], NUM_OUTPUTS))   # input-independent
    return mean, std


# ------------------------------- deterministic parameters -------------------------------
def orthogonal_init(key, in_dim, out_dim, scale=np.sqrt(2.0)):
    # mirrors init(m, nn.init.orthogonal_, zeros_, sqrt(2))
    n = max(in_dim, out_dim)
    a = jax.random.normal(key, (n, n), dtype=jnp.float32)
    q, r = jnp.linalg.qr(a)
    q = q * jnp.sign(jnp.diagonal(r))
    return (scale * q[:in_dim, :out_dim]).astype(jnp.float32)


def build_params(key):
    ks = jax.random.split(key, NUM_MODULES)

    def one(k):
        k1, k2, k3, k4, k5 = jax.random.split(k, 5)
        w1a = orthogonal_init(k1, SPLICE, DEC_HIDDEN)
        w1b = orthogonal_init(k2, DEC_HIDDEN, DEC_HIDDEN)
        w2full = orthogonal_init(k3, 2 + DEC_HIDDEN, MOD_HIDDEN)    # Linear(len_idx + D, M)
        w2o, w2h = w2full[:2], w2full[2:]
        w2b = orthogonal_init(k4, MOD_HIDDEN, MOD_HIDDEN)
        w2c = orthogonal_init(k5, MOD_HIDDEN, 1)
        return dict(
            w1a=w1a, b1a=jnp.zeros((1, DEC_HIDDEN), jnp.float32),
            w1b=w1b, b1b=jnp.zeros((1, DEC_HIDDEN), jnp.float32),
            w2o=w2o, w2h=w2h, b2a=jnp.zeros((1, MOD_HIDDEN), jnp.float32),
            w2b=w2b, b2b=jnp.zeros((1, MOD_HIDDEN), jnp.float32),
            w2c=w2c, b2c=jnp.zeros((1, 1), jnp.float32),
            logstd=jnp.zeros((1,), jnp.float32),                    # AddBias(torch.zeros(1))
        )

    per = [one(k) for k in ks]
    return {name: jnp.stack([m[name] for m in per], axis=0) for name in per[0]}


def pack_params(p):
    """One-time packing: fuse the two controller modules along lanes into a single
    [SLAB_ROWS, FUSED] slab, and precompute the input-independent std row."""
    f32 = jnp.float32

    def bdiag(w_pair):                                   # block-diag of two [32,32] -> [64,64]
        z = jnp.zeros_like(w_pair[0])
        top = jnp.concatenate([w_pair[0], z], axis=1)
        bot = jnp.concatenate([z, w_pair[1]], axis=1)
        return jnp.concatenate([top, bot], axis=0)

    w1a_f = jnp.concatenate([p['w1a'][m] for m in range(NUM_MODULES)], axis=1)   # [32, 64]
    w1b_f = bdiag(p['w1b'])
    w2h_f = bdiag(p['w2h'])
    w2b_f = bdiag(p['w2b'])

    # Final Linear(32,1) per module -> block-diagonal projection, one output column per module.
    wc_f = jnp.zeros((FUSED, FUSED), f32)
    for m in range(NUM_MODULES):
        wc_f = wc_f.at[m * MOD_HIDDEN:(m + 1) * MOD_HIDDEN, m].set(p['w2c'][m][:, 0])

    # Obs weights per limb: row (j) -> joint pos, row (NUM_OUTPUTS + j) -> joint vel,
    # placed into module m's lane block for joint j = NUM_MODULES*limb + m.
    wobs_blocks = []
    for limb in range(N_LIMBS):
        w = jnp.zeros((JPV, FUSED), f32)
        for m in range(NUM_MODULES):
            j = NUM_MODULES * limb + m
            cs = m * MOD_HIDDEN
            w = w.at[j, cs:cs + MOD_HIDDEN].set(p['w2o'][m][0])
            w = w.at[NUM_OUTPUTS + j, cs:cs + MOD_HIDDEN].set(p['w2o'][m][1])
        wobs_blocks.append(w)
    wobs_f = jnp.concatenate(wobs_blocks, axis=0)                                # [16, 64]

    # Biases fused to 64 lanes; all packed into one aligned 8-row tile.
    b1a_f = jnp.concatenate([p['b1a'][m] for m in range(NUM_MODULES)], axis=1)
    b1b_f = jnp.concatenate([p['b1b'][m] for m in range(NUM_MODULES)], axis=1)
    b2a_f = jnp.concatenate([p['b2a'][m] for m in range(NUM_MODULES)], axis=1)
    b2b_f = jnp.concatenate([p['b2b'][m] for m in range(NUM_MODULES)], axis=1)
    bc_f = jnp.zeros((1, FUSED), f32)
    for m in range(NUM_MODULES):
        bc_f = bc_f.at[0, m].set(p['b2c'][m, 0, 0])
    bias_block = jnp.concatenate(
        [b1a_f, b1b_f, b2a_f, b2b_f, bc_f, jnp.zeros((3, FUSED), f32)], axis=0)  # [8, 64]

    slab = jnp.concatenate([w1a_f, w1b_f, w2h_f, w2b_f, wc_f, wobs_f, bias_block], axis=0)
    assert slab.shape == (SLAB_ROWS, FUSED)

    # 'shared' logstd mode: std_j = exp(logstd[j % NUM_MODULES]) — input independent, so it
    # never enters the kernel (saves 1 input DMA + 1 output DMA + exp/broadcast/store).
    mod_of_joint = np.array([j % NUM_MODULES for j in range(NUM_OUTPUTS)])
    std_row = jnp.exp(p['logstd'][mod_of_joint, 0])[None, :]                     # [1, 4]
    return slab, std_row


# --------------------------------- pure-JAX reference -----------------------------------
def reference_forward(x, obs, p):
    hp = jax.lax.Precision.HIGHEST
    jpv = obs[:, BASE_STATE_LEN:]
    means, logstds = [], []
    for j in range(NUM_OUTPUTS):
        m = j % NUM_MODULES
        sp = j // NUM_MODULES
        xs = x[:, sp * SPLICE:(sp + 1) * SPLICE]
        h = jnp.tanh(jnp.dot(xs, p['w1a'][m], precision=hp) + p['b1a'][m, 0])
        h = jnp.tanh(jnp.dot(h, p['w1b'][m], precision=hp) + p['b1b'][m, 0])
        o = jnp.stack([jpv[:, j], jpv[:, j + NUM_OUTPUTS]], axis=-1)
        z = jnp.tanh(jnp.dot(o, p['w2o'][m], precision=hp)
                     + jnp.dot(h, p['w2h'][m], precision=hp) + p['b2a'][m, 0])
        z = jnp.tanh(jnp.dot(z, p['w2b'][m], precision=hp) + p['b2b'][m, 0])
        means.append(jnp.dot(z, p['w2c'][m], precision=hp) + p['b2c'][m, 0])
        logstds.append(jnp.broadcast_to(p['logstd'][m], (x.shape[0], 1)))
    return jnp.concatenate(means, -1), jnp.exp(jnp.concatenate(logstds, -1))


if __name__ == "__main__":
    key = jax.random.PRNGKey(0)
    kx, ko, kp = jax.random.split(key, 3)
    x = jax.random.normal(kx, (B, BASE_HIDDEN), dtype=jnp.float32)
    obs = jax.random.normal(ko, (B, OBS_DIM), dtype=jnp.float32)
    params = build_params(kp)
    slab, std_row = pack_params(params)      # one-time weight packing + std precompute

    mean, std = low_policy_forward(x, obs, slab, std_row)
    jax.block_until_ready((mean, std))

    ref_mean, ref_std = reference_forward(x, obs, params)
    assert mean.shape == (B, NUM_OUTPUTS) and std.shape == (B, NUM_OUTPUTS)
    # Kernel dots run at Precision.HIGHEST (fp32 contraction), so the tolerance is tightened
    # from the previous 2e-3 (default/bf16 MXU path) to 1e-4.
    np.testing.assert_allclose(np.asarray(mean), np.asarray(ref_mean), rtol=1e-4, atol=1e-4)
    np.testing.assert_allclose(np.asarray(std), np.asarray(ref_std), rtol=1e-6, atol=1e-6)
    print("KERNEL_OK")
</pallas_src>

<mosaic_0001>
module attributes {stable_mosaic.version = 11 : i64} {
  func.func @low_policy_kernel(%arg0: memref<8x64xf32, #tpu.memory_space<vmem>>, %arg1: memref<8x24xf32, #tpu.memory_space<vmem>>, %arg2: memref<312x64xf32, #tpu.memory_space<vmem>>, %arg3: memref<8x4xf32, #tpu.memory_space<vmem>>) attributes {dimension_semantics = [], scalar_prefetch = 0 : i64, scratch_operands = 0 : i64, tpu.core_type = #tpu.core_type<tc>} {
    %c0 = arith.constant 0 : index
    %c0_0 = arith.constant 0 : index
    %0 = vector.load %arg0[%c0, %c0_0] : memref<8x64xf32, #tpu.memory_space<vmem>>, vector<8x64xf32>
    %c0_1 = arith.constant 0 : index
    %c16 = arith.constant 16 : index
    %1 = vector.load %arg1[%c0_1, %c16] : memref<8x24xf32, #tpu.memory_space<vmem>>, vector<8x8xf32>
    %2 = vector.extract_strided_slice %0 {offsets = [0, 0], sizes = [8, 32], strides = [1, 1]} : vector<8x64xf32> to vector<8x32xf32>
    %3 = vector.extract_strided_slice %0 {offsets = [0, 32], sizes = [8, 32], strides = [1, 1]} : vector<8x64xf32> to vector<8x32xf32>
    %4 = tpu.concatenate %2, %3 in 0 : vector<8x32xf32>, vector<8x32xf32> -> vector<16x32xf32>
    %c0_2 = arith.constant 0 : index
    %c0_3 = arith.constant 0 : index
    %5 = vector.load %arg2[%c0_2, %c0_3] : memref<312x64xf32, #tpu.memory_space<vmem>>, vector<32x64xf32>
    %c32 = arith.constant 32 : index
    %c0_4 = arith.constant 0 : index
    %6 = vector.load %arg2[%c32, %c0_4] : memref<312x64xf32, #tpu.memory_space<vmem>>, vector<64x64xf32>
    %c96 = arith.constant 96 : index
    %c0_5 = arith.constant 0 : index
    %7 = vector.load %arg2[%c96, %c0_5] : memref<312x64xf32, #tpu.memory_space<vmem>>, vector<64x64xf32>
    %c160 = arith.constant 160 : index
    %c0_6 = arith.constant 0 : index
    %8 = vector.load %arg2[%c160, %c0_6] : memref<312x64xf32, #tpu.memory_space<vmem>>, vector<64x64xf32>
    %c224 = arith.constant 224 : index
    %c0_7 = arith.constant 0 : index
    %9 = vector.load %arg2[%c224, %c0_7] : memref<312x64xf32, #tpu.memory_space<vmem>>, vector<64x64xf32>
    %c304 = arith.constant 304 : index
    %c0_8 = arith.constant 0 : index
    %10 = vector.load %arg2[%c304, %c0_8] : memref<312x64xf32, #tpu.memory_space<vmem>>, vector<8x64xf32>
    %11 = vector.extract_strided_slice %10 {offsets = [0, 0], sizes = [1, 64], strides = [1, 1]} : vector<8x64xf32> to vector<1x64xf32>
    %12 = vector.extract_strided_slice %10 {offsets = [1, 0], sizes = [1, 64], strides = [1, 1]} : vector<8x64xf32> to vector<1x64xf32>
    %13 = vector.extract_strided_slice %10 {offsets = [2, 0], sizes = [1, 64], strides = [1, 1]} : vector<8x64xf32> to vector<1x64xf32>
    %14 = vector.extract_strided_slice %10 {offsets = [3, 0], sizes = [1, 64], strides = [1, 1]} : vector<8x64xf32> to vector<1x64xf32>
    %15 = vector.extract_strided_slice %10 {offsets = [4, 0], sizes = [1, 64], strides = [1, 1]} : vector<8x64xf32> to vector<1x64xf32>
    %cst = arith.constant dense<0.000000e+00> : vector<16x64xf32>
    %16 = tpu.matmul %4, %5, %cst {dimension_numbers = #tpu.dot_dimension_numbers<[1], [0], [0], [1], [0, 0, 1, 1], [], []>, precision = #tpu.contract_precision<fp32>} : vector<16x32xf32>, vector<32x64xf32>, vector<16x64xf32> -> vector<16x64xf32>
    %17 = vector.broadcast %11 : vector<1x64xf32> to vector<16x64xf32>
    %18 = arith.addf %16, %17 : vector<16x64xf32>
    %19 = math.tanh %18 : vector<16x64xf32>
    %cst_9 = arith.constant dense<0.000000e+00> : vector<16x64xf32>
    %20 = tpu.matmul %19, %6, %cst_9 {dimension_numbers = #tpu.dot_dimension_numbers<[1], [0], [0], [1], [0, 0, 1, 1], [], []>, precision = #tpu.contract_precision<fp32>} : vector<16x64xf32>, vector<64x64xf32>, vector<16x64xf32> -> vector<16x64xf32>
    %21 = vector.broadcast %12 : vector<1x64xf32> to vector<16x64xf32>
    %22 = arith.addf %20, %21 : vector<16x64xf32>
    %23 = math.tanh %22 : vector<16x64xf32>
    %c288 = arith.constant 288 : index
    %c0_10 = arith.constant 0 : index
    %24 = vector.load %arg2[%c288, %c0_10] : memref<312x64xf32, #tpu.memory_space<vmem>>, vector<8x64xf32>
    %cst_11 = arith.constant dense<0.000000e+00> : vector<8x64xf32>
    %25 = tpu.matmul %1, %24, %cst_11 {dimension_numbers = #tpu.dot_dimension_numbers<[1], [0], [0], [1], [0, 0, 1, 1], [], []>, precision = #tpu.contract_precision<fp32>} : vector<8x8xf32>, vector<8x64xf32>, vector<8x64xf32> -> vector<8x64xf32>
    %c296 = arith.constant 296 : index
    %c0_12 = arith.constant 0 : index
    %26 = vector.load %arg2[%c296, %c0_12] : memref<312x64xf32, #tpu.memory_space<vmem>>, vector<8x64xf32>
    %cst_13 = arith.constant dense<0.000000e+00> : vector<8x64xf32>
    %27 = tpu.matmul %1, %26, %cst_13 {dimension_numbers = #tpu.dot_dimension_numbers<[1], [0], [0], [1], [0, 0, 1, 1], [], []>, precision = #tpu.contract_precision<fp32>} : vector<8x8xf32>, vector<8x64xf32>, vector<8x64xf32> -> vector<8x64xf32>
    %28 = tpu.concatenate %25, %27 in 0 : vector<8x64xf32>, vector<8x64xf32> -> vector<16x64xf32>
    %cst_14 = arith.constant dense<0.000000e+00> : vector<16x64xf32>
    %29 = tpu.matmul %23, %7, %cst_14 {dimension_numbers = #tpu.dot_dimension_numbers<[1], [0], [0], [1], [0, 0, 1, 1], [], []>, precision = #tpu.contract_precision<fp32>} : vector<16x64xf32>, vector<64x64xf32>, vector<16x64xf32> -> vector<16x64xf32>
    %30 = arith.addf %29, %28 : vector<16x64xf32>
    %31 = vector.broadcast %13 : vector<1x64xf32> to vector<16x64xf32>
    %32 = arith.addf %30, %31 : vector<16x64xf32>
    %33 = math.tanh %32 : vector<16x64xf32>
    %cst_15 = arith.constant dense<0.000000e+00> : vector<16x64xf32>
    %34 = tpu.matmul %33, %8, %cst_15 {dimension_numbers = #tpu.dot_dimension_numbers<[1], [0], [0], [1], [0, 0, 1, 1], [], []>, precision = #tpu.contract_precision<fp32>} : vector<16x64xf32>, vector<64x64xf32>, vector<16x64xf32> -> vector<16x64xf32>
    %35 = vector.broadcast %14 : vector<1x64xf32> to vector<16x64xf32>
    %36 = arith.addf %34, %35 : vector<16x64xf32>
    %37 = math.tanh %36 : vector<16x64xf32>
    %cst_16 = arith.constant dense<0.000000e+00> : vector<16x64xf32>
    %38 = tpu.matmul %37, %9, %cst_16 {dimension_numbers = #tpu.dot_dimension_numbers<[1], [0], [0], [1], [0, 0, 1, 1], [], []>, precision = #tpu.contract_precision<fp32>} : vector<16x64xf32>, vector<64x64xf32>, vector<16x64xf32> -> vector<16x64xf32>
    %39 = vector.broadcast %15 : vector<1x64xf32> to vector<16x64xf32>
    %40 = arith.addf %38, %39 : vector<16x64xf32>
    %41 = vector.extract_strided_slice %40 {offsets = [0, 0], sizes = [8, 2], strides = [1, 1]} : vector<16x64xf32> to vector<8x2xf32>
    %42 = vector.extract_strided_slice %40 {offsets = [8, 0], sizes = [8, 2], strides = [1, 1]} : vector<16x64xf32> to vector<8x2xf32>
    %43 = tpu.concatenate %41, %42 in 1 : vector<8x2xf32>, vector<8x2xf32> -> vector<8x4xf32>
    %c0_17 = arith.constant 0 : index
    %c0_18 = arith.constant 0 : index
    %44 = vector.load %arg3[%c0_17, %c0_18] : memref<8x4xf32, #tpu.memory_space<vmem>>, vector<8x4xf32>
    tpu.vector_store %arg3[%c0_17, %c0_18], %43 {strides = array<i32>} : memref<8x4xf32, #tpu.memory_space<vmem>>, vector<8x4xf32>,
    return
  }
}

</mosaic_0001>

<bundles_post_ra>
// kernel: low_policy_forward.1
= control target key start
LH: loop header
LB: loop body
LE: loop exit
PB: predicated region body
PF: predicated region fallthrough
CT: control target
= control target key end

     0   :  { %vm60_vm0 = vcmask 261120   ;;  %s4780_s18 = smov 96   ;;  %s4781_s13 = smov 112   ;;  %vm599_vm1 = vcmask 523264   ;;  %vm1192_vm2 = vcmask 64512   ;;  %vm4783_vm3 = vmmov 0   ;;  %s5741_s0 = inlined_call_operand.vmem [shape: f32[8,64], index: 0, kind: input, shape index: {}]   ;;  %s5742_s2 = inlined_call_operand.vmem [shape: f32[312,64], index: 2, kind: input, shape index: {}]   ;;  %s5743_s1 = inlined_call_operand.vmem [shape: f32[8,24], index: 1, kind: input, shape index: {}]   ;;  %s5744_s3 = inlined_call_operand.vmem [shape: f32[8,4], index: 3, kind: output, shape index: {}]  }
   0x1   :  { %v14_v0 = vld [vmem:[%s5741_s0] sm:$0xff]  ;;  %v22_v1 = vld [vmem:[%s5742_s2 + $0x18] sm:$0xff]  ;;  %v21_v2 = vld [vmem:[%s5742_s2 + $0x10] sm:$0xff]  ;;  %vm3868_vm4 = vcmask 15360   ;;  %vm3870_vm5 = vcmask 31744  }
   0x2   :  { %17 = vrot.lane.b32.xlu0 %v14_v0, %s4780_s18  ;;  %v61_v3 = vsel %vm60_vm0, %v14_v0, 0  ;;  %v4815_v4 = vand.u32 4294901760, %v22_v1  ;;  %v4817_v5 = vand.u32 4294901760, %v21_v2  ;;  %v20_v6 = vld [vmem:[%s5742_s2 + $0x8] sm:$0xff]  ;;  %v19_v7 = vld [vmem:[%s5742_s2] sm:$0xff]  ;;  %v30_v38 = vld [vmem:[%s5742_s2 + $0x58] sm:$0xff] }
   0x3   :  { %v4825_v8 = vand.u32 4294901760, %v61_v3  ;;  %v4827_v9 = vand.u32 4294901760, %v20_v6  ;;  %v4829_v10 = vand.u32 4294901760, %v19_v7  ;;  %v4904_v39 = vand.u32 4294901760, %v30_v38  ;;  %v29_v40 = vld [vmem:[%s5742_s2 + $0x50] sm:$0xff]  ;;  %v28_v43 = vld [vmem:[%s5742_s2 + $0x48] sm:$0xff] }
   0x4   :  { %v180_v11 = vsub.f32 %v22_v1, %v4815_v4  ;;  %v187_v12 = vsub.f32 %v21_v2, %v4817_v5  ;;  %4176 = vmatprep.subr.mxu0 %v4815_v4  ;;  %v4912_v42 = vand.u32 4294901760, %v29_v40  ;;  %v4925_v46 = vand.u32 4294901760, %v28_v43  ;;  %v27_v47 = vld [vmem:[%s5742_s2 + $0x40] sm:$0xff]  ;;  %v26_v52 = vld [vmem:[%s5742_s2 + $0x38] sm:$0xff]  ;;  %v25_v58 = vld [vmem:[%s5742_s2 + $0x30] sm:$0xff] }
   0x5   :  { %v4835_v13 = vsub.f32 %v61_v3, %v4825_v8  ;;  %v4838_v14 = vsub.f32 %v20_v6, %v4827_v9  ;;  %v4841_v15 = vsub.f32 %v19_v7, %v4829_v10  ;;  %4195 = vmatprep.mubr.f32.mxu1 %v4825_v8  ;;  %4177 = vmatpush3.msra.mxu0 %v4815_v4  ;;  %v4940_v51 = vand.u32 4294901760, %v27_v47  ;;  %v24_v59 = vld [vmem:[%s5742_s2 + $0x28] sm:$0xff]  ;;  %v23_v60 = vld [vmem:[%s5742_s2 + $0x20] sm:$0xff] }
   0x6   :  { %v4845_v16 = vand.u32 4294901760, %v180_v11  ;;  %v4847_v17 = vand.u32 4294901760, %v187_v12  ;;  %4178 = vmatprep.subr.mxu0 %v4817_v5  ;;  %v4910_v41 = vsub.f32 %v30_v38, %v4904_v39  ;;  %v4923_v45 = vsub.f32 %v29_v40, %v4912_v42 }
   0x7   :  { %v4851_v18 = vand.u32 4294901760, %v4838_v14  ;;  %v4854_v19 = vand.u32 4294901760, %v4841_v15  ;;  %4179 = vmatpush3.msra.mxu0 %v4817_v5  ;;  %v136_v20 = vand.u32 4294901760, %v4835_v13  ;;  %v4938_v50 = vsub.f32 %v28_v43, %v4925_v46 }
   0x8   :  { %v182_v21 = vsub.f32 %v180_v11, %v4845_v16  ;;  %v189_v22 = vsub.f32 %v187_v12, %v4847_v17  ;;  %4180 = vmatprep.subr.mxu0 %v4827_v9  ;;  %v4920_v44 = vand.u32 4294901760, %v4910_v41  ;;  %v4935_v49 = vand.u32 4294901760, %v4923_v45 }
   0x9   :  { %v196_v23 = vsub.f32 %v4838_v14, %v4851_v18  ;;  %4181 = vmatpush3.msra.mxu0 %v4827_v9  ;;  %v137_v24 = vsub.f32 %v4835_v13, %v136_v20  ;;  %v203_v27 = vsub.f32 %v4841_v15, %v4854_v19  ;;  %v4950_v55 = vand.u32 4294901760, %v4938_v50 }
   0xa   :  { %v183_v25 = vand.u32 4294901760, %v182_v21  ;;  %v190_v26 = vand.u32 4294901760, %v189_v22  ;;  %4182 = vmatprep.subr.mxu0 %v4829_v10  ;;  %v719_v48 = vsub.f32 %v4910_v41, %v4920_v44  ;;  %v726_v54 = vsub.f32 %v4923_v45, %v4935_v49  ;;  %v15_v22 = vld [vmem:[%s5743_s1] sm:$0xff] }
   0xb   :  { %4183 = vmatpush3.msra.mxu0 %v4829_v10  ;;  %v138_v28 = vand.u32 4294901760, %v137_v24  ;;  %v197_v29 = vand.u32 4294901760, %v196_v23  ;;  %v204_v30 = vand.u32 4294901760, %v203_v27  ;;  %v4953_v56 = vsub.f32 %v27_v47, %v4940_v51  ;;  %1190 = vrot.lane.b32.xlu0 %v15_v22, %s4781_s13 }
   0xc   :  { %4187 = vmatprep.subr.mxu1 %v183_v25  ;;  %4198 = vmatprep.subr.mxu0 %v180_v11  ;;  %v720_v53 = vand.u32 4294901760, %v719_v48  ;;  %v4956_v57 = vand.u32 4294901760, %v26_v52  ;;  %v727_v61 = vand.u32 4294901760, %v726_v54  ;;  %v733_v62 = vsub.f32 %v4938_v50, %v4950_v55 }
   0xd   :  { %4188 = vmatpush3.msra.mxu1 %v183_v25  ;;  %4184 = vmatprep.mubr.f32.mxu0 %v138_v28  ;;  %v4971_v63 = vand.u32 4294901760, %v4953_v56  ;;  %v4973_v0 = vand.u32 4294901760, %v25_v58  ;;  %v4978_v2 = vand.u32 4294901760, %v24_v59  ;;  %v4980_v3 = vand.u32 4294901760, %v23_v60 }
   0xe   :  { %4189 = vmatprep.subr.mxu1 %v190_v26  ;;  %v4976_v1 = vsub.f32 %v26_v52, %v4956_v57  ;;  %v56_v23 = vlaneseq }
   0xf   :  { %4190 = vmatpush3.msra.mxu1 %v190_v26  ;;  %v4986_v6 = vsub.f32 %v25_v58, %v4973_v0  ;;  %v5032_v26 = vld [vmem:[%s5742_s2 + $0x130] sm:$0xff] }
  0x10   :  { %4191 = vmatprep.subr.mxu1 %v197_v29  ;;  %v4990_v7 = vand.u32 4294901760, %v4976_v1  ;;  %v5026_v24 = vshrl.u32 %v56_v23, 7 }
  0x11   :  { %4192 = vmatpush3.msra.mxu1 %v197_v29 }
  0x12   :  { %4193 = vmatprep.subr.mxu1 %v204_v30  ;;  %v58_v25 = vsub.s32 0, %v5026_v24 }
  0x13   :  { %4194 = vmatpush3.msra.mxu1 %v204_v30 }
  0x14   :  { %4209 = vmatprep.subr.mxu1 %v4815_v4  ;;  %v59_v28 = vrot.slane %v5032_v26, %v58_v25 }
  0x74   :  { %v18_v31 = vpop.permute.xlu0 %17 }
  0x75   :  { %v63_v32 = vsel %vm60_vm0, %v18_v31, 0 }
  0x76   :  { %v144_v33 = vand.u32 4294901760, %v63_v32 }
  0x78   :  { %v145_v34 = vsub.f32 %v63_v32, %v144_v33  ;;  %4196 = vmatmul.mubr.f32.vlgmr.msra.gmra.mxu1 %v144_v33 }
  0x79   :  { %4210 = vmatpush3.msra.mxu1 %v4815_v4  ;;  %4217 = vmatprep.mubr.f32.mxu1 %v136_v20 }
  0x7a   :  { %v146_v35 = vand.u32 4294901760, %v145_v34  ;;  %4211 = vmatprep.subr.mxu1 %v4817_v5 }
  0x7b   :  { %4212 = vmatpush3.msra.mxu1 %v4817_v5 }
  0x7c   :  { %4213 = vmatprep.subr.mxu1 %v4827_v9  ;;  %v147_v36 = vsub.f32 %v145_v34, %v146_v35 }
  0x7d   :  { %4214 = vmatpush3.msra.mxu1 %v4827_v9 }
  0x7e   :  { %4215 = vmatprep.subr.mxu1 %v4829_v10  ;;  %v148_v37 = vand.u32 4294901760, %v147_v36 }
  0x7f   :  { %4216 = vmatpush3.msra.mxu1 %v4829_v10 }
  0x80   :  { %4218 = vmatmul.mubr.f32.vlgmr.msra.gmra.mxu1 %v146_v35  ;;  %4231 = vmatprep.subr.mxu1 %v4815_v4 }
  0x81   :  { %4185 = vmatmul.mubr.f32.vlgmr.msra.gmra.mxu0 %v148_v37  ;;  %4232 = vmatpush3.msra.mxu1 %v4815_v4  ;;  %v734_v4 = vand.u32 4294901760, %v733_v62 }
  0x82   :  { %4199 = vmatpush3.msra.mxu0 %v180_v11  ;;  %4233 = vmatprep.subr.mxu1 %v4817_v5  ;;  %v5000_v11 = vand.u32 4294901760, %v4986_v6 }
  0x83   :  { %4200 = vmatprep.subr.mxu0 %v187_v12  ;;  %4234 = vmatpush3.msra.mxu1 %v4817_v5  ;;  %v740_v5 = vsub.f32 %v4953_v56, %v4971_v63 }
  0x84   :  { %4201 = vmatpush3.msra.mxu0 %v187_v12  ;;  %4235 = vmatprep.subr.mxu1 %v4827_v9  ;;  %v747_v12 = vsub.f32 %v4976_v1, %v4990_v7 }
  0x85   :  { %4202 = vmatprep.subr.mxu0 %v4838_v14  ;;  %4236 = vmatpush3.msra.mxu1 %v4827_v9  ;;  %v4996_v9 = vsub.f32 %v23_v60, %v4980_v3 }
  0x86   :  { %4203 = vmatpush3.msra.mxu0 %v4838_v14  ;;  %4237 = vmatprep.subr.mxu1 %v4829_v10 }
  0x87   :  { %4204 = vmatprep.subr.mxu0 %v4841_v15  ;;  %4206 = vmatprep.mubr.f32.mxu0 %v4835_v13  ;;  %v5009_v14 = vand.u32 4294901760, %v4996_v9 }
  0x88   :  { %4205 = vmatpush3.msra.mxu0 %v4841_v15  ;;  %4238 = vmatpush3.msra.mxu1 %v4829_v10  ;;  %v741_v10 = vand.u32 4294901760, %v740_v5  ;;  %v754_v15 = vsub.f32 %v4986_v6, %v5000_v11 }
  0x89   :  { %4239 = vmatprep.mubr.f32.mxu1 %v4825_v8  ;;  %4207 = vmatmul.mubr.f32.vlgmr.msra.gmra.mxu0 %v145_v34 }
  0x8a   :  { %4220 = vmatprep.subr.mxu0 %v4845_v16  ;;  %4240 = vmatmul.mubr.f32.vlgmr.msra.gmra.mxu1 %v144_v33 }
  0x8b   :  { %4221 = vmatpush3.msra.mxu0 %v4845_v16  ;;  %4228 = vmatprep.mubr.f32.mxu0 %v4825_v8  ;;  %v4993_v8 = vsub.f32 %v24_v59, %v4978_v2  ;;  %v748_v16 = vand.u32 4294901760, %v747_v12 }
  0x8c   :  { %4222 = vmatprep.subr.mxu0 %v4847_v17  ;;  %4261 = vmatprep.subr.mxu1 %v720_v53 }
  0x8d   :  { %4223 = vmatpush3.msra.mxu0 %v4847_v17  ;;  %4262 = vmatpush3.msra.mxu1 %v720_v53  ;;  %v5006_v13 = vand.u32 4294901760, %v4993_v8 }
  0x8e   :  { %4224 = vmatprep.subr.mxu0 %v4851_v18  ;;  %4263 = vmatprep.subr.mxu1 %v727_v61 }
  0x8f   :  { %4225 = vmatpush3.msra.mxu0 %v4851_v18  ;;  %4264 = vmatpush3.msra.mxu1 %v727_v61  ;;  %v761_v17 = vsub.f32 %v4993_v8, %v5006_v13  ;;  %v768_v18 = vsub.f32 %v4996_v9, %v5009_v14 }
  0x90   :  { %4226 = vmatprep.subr.mxu0 %v4854_v19  ;;  %4265 = vmatprep.subr.mxu1 %v734_v4 }
  0x91   :  { %4227 = vmatpush3.msra.mxu0 %v4854_v19  ;;  %4266 = vmatpush3.msra.mxu1 %v734_v4  ;;  %v755_v19 = vand.u32 4294901760, %v754_v15  ;;  %v762_v20 = vand.u32 4294901760, %v761_v17  ;;  %v769_v21 = vand.u32 4294901760, %v768_v18 }
  0x92   :  { %4229 = vmatmul.mubr.f32.vlgmr.msra.gmra.mxu0 %v144_v33  ;;  %4242 = vmatprep.subr.mxu0 %v4904_v39 }
  0x93   :  { %4243 = vmatpush3.msra.mxu0 %v4904_v39  ;;  %4267 = vmatprep.subr.mxu1 %v741_v10 }
  0x94   :  { %4244 = vmatprep.subr.mxu0 %v4912_v42  ;;  %4268 = vmatpush3.msra.mxu1 %v741_v10 }
  0x95   :  { %4245 = vmatpush3.msra.mxu0 %v4912_v42  ;;  %4269 = vmatprep.subr.mxu1 %v748_v16 }
  0x96   :  { %4246 = vmatprep.subr.mxu0 %v4925_v46  ;;  %4270 = vmatpush3.msra.mxu1 %v748_v16 }
  0x97   :  { %4247 = vmatpush3.msra.mxu0 %v4925_v46  ;;  %4271 = vmatprep.subr.mxu1 %v755_v19 }
  0x98   :  { %4248 = vmatprep.subr.mxu0 %v4940_v51  ;;  %4272 = vmatpush3.msra.mxu1 %v755_v19 }
  0x99   :  { %4249 = vmatpush3.msra.mxu0 %v4940_v51  ;;  %4273 = vmatprep.subr.mxu1 %v762_v20 }
  0x9a   :  { %4250 = vmatprep.subr.mxu0 %v4956_v57  ;;  %4274 = vmatpush3.msra.mxu1 %v762_v20 }
  0x9b   :  { %4251 = vmatpush3.msra.mxu0 %v4956_v57  ;;  %4275 = vmatprep.subr.mxu1 %v769_v21 }
  0x9c   :  { %4252 = vmatprep.subr.mxu0 %v4973_v0  ;;  %4276 = vmatpush3.msra.mxu1 %v769_v21 }
  0x9d   :  { %4253 = vmatpush3.msra.mxu0 %v4973_v0  ;;  %4299 = vmatprep.subr.mxu1 %v4904_v39 }
  0x9e   :  { %4254 = vmatprep.subr.mxu0 %v4978_v2 }
  0x9f   :  { %4255 = vmatpush3.msra.mxu0 %v4978_v2 }
  0xa0   :  { %4256 = vmatprep.subr.mxu0 %v4980_v3 }
  0xa1   :  { %4257 = vmatpush3.msra.mxu0 %v4980_v3 }
  0xa2   :  { %4280 = vmatprep.subr.mxu0 %v4910_v41 }
 0x138   :  { %v4197_v29 = vpop.f32.mrf.mxu1 }
 0x13a   :  { %v241_v34 = vpop.f32.mrf.mxu1 }
 0x140   :  { %v4219_v36 = vpop.f32.mrf.mxu1 }
 0x141   :  { %v4186_v27 = vpop.f32.mrf.mxu0 }
 0x142   :  { %v151_v31 = vadd.f32 %v4186_v27, %v59_v28  ;;  %v411_v47 = vpop.f32.mrf.mxu1 }
 0x143   :  { %v140_v30 = vpop.f32.mrf.mxu0 }
 0x144   :  { %v141_v32 = vadd.f32 %v140_v30, %v59_v28  ;;  %v248_v35 = vadd.f32 %v4197_v29, %v151_v31  ;;  %v36_v29 = vld [vmem:[%s5742_s2 + $0x88] sm:$0xff] }
 0x146   :  { %v242_v40 = vadd.f32 %v241_v34, %v141_v32  ;;  %v5156_v32 = vand.u32 4294901760, %v36_v29 }
 0x149   :  { %v4208_v33 = vpop.f32.mrf.mxu0 }
 0x14a   :  { %v335_v38 = vadd.f32 %v4208_v33, %v248_v35  ;;  %v4241_v52 = vpop.f32.mrf.mxu1  ;;  %v35_v33 = vld [vmem:[%s5742_s2 + $0x80] sm:$0xff] }
 0x14b   :  { %v327_v37 = vpop.f32.mrf.mxu0 }
 0x14c   :  { %v328_v43 = vadd.f32 %v327_v37, %v242_v40  ;;  %v420_v48 = vadd.f32 %v4219_v36, %v335_v38  ;;  %v583_v62 = vpop.f32.mrf.mxu1  ;;  %v5169_v36 = vsub.f32 %v36_v29, %v5156_v32  ;;  %v5171_v37 = vand.u32 4294901760, %v35_v33  ;;  %v34_v38 = vld [vmem:[%s5742_s2 + $0x78] sm:$0xff] }
 0x14e   :  { %v412_v58 = vadd.f32 %v411_v47, %v328_v43  ;;  %v5181_v47 = vand.u32 4294901760, %v5169_v36 }
 0x152   :  { %v4230_v53 = vpop.f32.mrf.mxu0 }
 0x153   :  { %v509_v54 = vadd.f32 %v4230_v53, %v420_v48  ;;  %v5184_v48 = vsub.f32 %v35_v33, %v5171_v37  ;;  %v32_v53 = vld [vmem:[%s5742_s2 + $0x68] sm:$0xff] }
 0x154   :  { %v502_v59 = vpop.f32.mrf.mxu0 }
 0x155   :  { %v590_v60 = vadd.f32 %v4241_v52, %v509_v54  ;;  %v503_v61 = vadd.f32 %v502_v59, %v412_v58  ;;  %v33_v52 = vld [vmem:[%s5742_s2 + $0x70] sm:$0xff]  ;;  %v31_v54 = vld [vmem:[%s5742_s2 + $0x60] sm:$0xff]  ;;  %v5196_v58 = vand.u32 4294901760, %v34_v38 }
 0x156   :  { %v5198_v59 = vand.u32 4294901760, %v33_v52 }
 0x157   :  { %4763 = vtanh.f32 %v590_v60  ;;  %v584_v4 = vadd.f32 %v583_v62, %v503_v61  ;;  %v5200_v60 = vand.u32 4294901760, %v32_v53  ;;  %v5202_v61 = vand.u32 4294901760, %v31_v54 }
 0x159   :  { %4765 = vtanh.f32 %v584_v4  ;;  %v2221_v4 = vsub.f32 %v5169_v36, %v5181_v47 }
 0x164   :  { %v4764_v5 = vpop.eup %4763 }
 0x165   :  { %v604_v10 = vsel %vm599_vm1, %v4764_v5, 0  ;;  %v5208_v5 = vand.u32 4294901760, %v5184_v48 }
 0x166   :  { %v4766_v12 = vpop.eup %4765  ;;  %v5036_v15 = vand.u32 4294901760, %v604_v10 }
 0x167   :  { %v601_v16 = vsel %vm599_vm1, %v4766_v12, 0  ;;  %v5214_v12 = vsub.f32 %v33_v52, %v5198_v59 }
 0x168   :  { %v679_v17 = vand.u32 4294901760, %v601_v16  ;;  %v690_v18 = vsub.f32 %v604_v10, %v5036_v15  ;;  %v5211_v10 = vsub.f32 %v34_v38, %v5196_v58 }
 0x16a   :  { %4277 = vmatprep.mubr.f32.mxu1 %v679_v17  ;;  %v680_v19 = vsub.f32 %v601_v16, %v679_v17  ;;  %v691_v20 = vand.u32 4294901760, %v690_v18  ;;  %v5220_v16 = vsub.f32 %v31_v54, %v5202_v61 }
 0x16b   :  { %4278 = vmatmul.mubr.f32.vlgmr.msra.gmra.mxu1 %v5036_v15 }
 0x16c   :  { %4300 = vmatpush3.msra.mxu1 %v4904_v39  ;;  %v681_v21 = vand.u32 4294901760, %v680_v19  ;;  %v692_v22 = vsub.f32 %v690_v18, %v691_v20 }
 0x16d   :  { %4301 = vmatprep.subr.mxu1 %v4912_v42 }
 0x16e   :  { %4302 = vmatpush3.msra.mxu1 %v4912_v42  ;;  %4315 = vmatprep.mubr.f32.mxu1 %v681_v21  ;;  %v682_v23 = vsub.f32 %v680_v19, %v681_v21  ;;  %v693_v27 = vand.u32 4294901760, %v692_v22  ;;  %v5235_v22 = vand.u32 4294901760, %v5220_v16 }
 0x16f   :  { %4303 = vmatprep.subr.mxu1 %v4925_v46 }
 0x170   :  { %4304 = vmatpush3.msra.mxu1 %v4925_v46  ;;  %v683_v25 = vand.u32 4294901760, %v682_v23 }
 0x171   :  { %4305 = vmatprep.subr.mxu1 %v4940_v51 }
 0x172   :  { %4306 = vmatpush3.msra.mxu1 %v4940_v51  ;;  %4258 = vmatprep.mubr.f32.mxu0 %v683_v25 }
 0x173   :  { %4307 = vmatprep.subr.mxu1 %v4956_v57  ;;  %4259 = vmatmul.mubr.f32.vlgmr.msra.gmra.mxu0 %v693_v27 }
 0x174   :  { %4281 = vmatpush3.msra.mxu0 %v4910_v41  ;;  %4308 = vmatpush3.msra.mxu1 %v4956_v57 }
 0x175   :  { %4282 = vmatprep.subr.mxu0 %v4923_v45  ;;  %4296 = vmatprep.mubr.f32.mxu0 %v680_v19  ;;  %v5226_v19 = vand.u32 4294901760, %v5211_v10 }
 0x176   :  { %4309 = vmatprep.subr.mxu1 %v4973_v0  ;;  %4283 = vmatpush3.msra.mxu0 %v4923_v45 }
 0x177   :  { %4310 = vmatpush3.msra.mxu1 %v4973_v0  ;;  %4284 = vmatprep.subr.mxu0 %v4938_v50  ;;  %v2235_v25 = vsub.f32 %v5211_v10, %v5226_v19 }
 0x178   :  { %4311 = vmatprep.subr.mxu1 %v4978_v2  ;;  %4285 = vmatpush3.msra.mxu0 %v4938_v50 }
 0x179   :  { %4312 = vmatpush3.msra.mxu1 %v4978_v2  ;;  %4286 = vmatprep.subr.mxu0 %v4953_v56 }
 0x17a   :  { %4313 = vmatprep.subr.mxu1 %v4980_v3  ;;  %4287 = vmatpush3.msra.mxu0 %v4953_v56 }
 0x17b   :  { %4314 = vmatpush3.msra.mxu1 %v4980_v3  ;;  %4288 = vmatprep.subr.mxu0 %v4976_v1 }
 0x17c   :  { %4316 = vmatmul.mubr.f32.vlgmr.msra.gmra.mxu1 %v691_v20  ;;  %4337 = vmatprep.subr.mxu1 %v4904_v39  ;;  %v5229_v20 = vand.u32 4294901760, %v5214_v12 }
 0x17d   :  { %4289 = vmatpush3.msra.mxu0 %v4976_v1  ;;  %4338 = vmatpush3.msra.mxu1 %v4904_v39  ;;  %v1191_v39 = vpop.permute.xlu0 %1190  ;;  %v1641_v1 = vld [vmem:[%s5742_s2 + $0x128] sm:$0xff] }
 0x17e   :  { %4353 = vmatprep.mubr.f32.mxu1 %v679_v17  ;;  %4290 = vmatprep.subr.mxu0 %v4986_v6  ;;  %v1193_v41 = vsel %vm1192_vm2, %v1191_v39, 0  ;;  %v2242_v27 = vsub.f32 %v5214_v12, %v5229_v20 }
 0x17f   :  { %4339 = vmatprep.subr.mxu1 %v4912_v42  ;;  %4291 = vmatpush3.msra.mxu0 %v4986_v6 }
 0x180   :  { %4340 = vmatpush3.msra.mxu1 %v4912_v42  ;;  %4292 = vmatprep.subr.mxu0 %v4993_v8  ;;  %v5105_v42 = vand.u32 4294901760, %v1193_v41 }
 0x181   :  { %4341 = vmatprep.subr.mxu1 %v4925_v46  ;;  %4293 = vmatpush3.msra.mxu0 %v4993_v8 }
 0x182   :  { %4342 = vmatpush3.msra.mxu1 %v4925_v46  ;;  %4294 = vmatprep.subr.mxu0 %v4996_v9  ;;  %v1188_v46 = vld [vmem:[%s5742_s2 + $0x120] sm:$0xff] }
 0x183   :  { %4343 = vmatprep.subr.mxu1 %v4940_v51  ;;  %4295 = vmatpush3.msra.mxu0 %v4996_v9  ;;  %v38_v9 = vld [vmem:[%s5742_s2 + $0x98] sm:$0xff] }
 0x184   :  { %4344 = vmatpush3.msra.mxu1 %v4940_v51  ;;  %4297 = vmatmul.mubr.f32.vlgmr.msra.gmra.mxu0 %v690_v18  ;;  %v2228_v18 = vsub.f32 %v5184_v48, %v5208_v5 }
 0x185   :  { %4318 = vmatprep.subr.mxu0 %v4920_v44  ;;  %4345 = vmatprep.subr.mxu1 %v4956_v57 }
 0x186   :  { %4319 = vmatpush3.msra.mxu0 %v4920_v44  ;;  %4334 = vmatprep.mubr.f32.mxu0 %v679_v17  ;;  %v1262_v44 = vsub.f32 %v1193_v41, %v5105_v42  ;;  %v2222_v17 = vand.u32 4294901760, %v2221_v4  ;;  %v2229_v23 = vand.u32 4294901760, %v2228_v18  ;;  %v2236_v41 = vand.u32 4294901760, %v2235_v25 }
 0x187   :  { %4346 = vmatpush3.msra.mxu1 %v4956_v57  ;;  %4320 = vmatprep.subr.mxu0 %v4935_v49 }
 0x188   :  { %4347 = vmatprep.subr.mxu1 %v4973_v0  ;;  %4321 = vmatpush3.msra.mxu0 %v4935_v49  ;;  %v1263_v45 = vand.u32 4294901760, %v1262_v44  ;;  %v1226_v49 = vand.u32 4294901760, %v1188_v46 }
 0x189   :  { %4348 = vmatpush3.msra.mxu1 %v4973_v0  ;;  %4322 = vmatprep.subr.mxu0 %v4950_v55 }
 0x18a   :  { %4349 = vmatprep.subr.mxu1 %v4978_v2  ;;  %4323 = vmatpush3.msra.mxu0 %v4950_v55  ;;  %v1303_v50 = vsub.f32 %v1188_v46, %v1226_v49  ;;  %v1264_v51 = vsub.f32 %v1262_v44, %v1263_v45  ;;  %v4782_v55 = vmov 0.0  }
 0x18b   :  { %4350 = vmatpush3.msra.mxu1 %v4978_v2  ;;  %4324 = vmatprep.subr.mxu0 %v4971_v63  ;;  %v1673_v2 = vand.u32 4294901760, %v1641_v1 }
 0x18c   :  { %4351 = vmatprep.subr.mxu1 %v4980_v3  ;;  %4325 = vmatpush3.msra.mxu0 %v4971_v63  ;;  %v1304_v56 = vand.u32 4294901760, %v1303_v50  ;;  %v1265_v57 = vand.u32 4294901760, %v1264_v51 }
 0x18d   :  { %4352 = vmatpush3.msra.mxu1 %v4980_v3  ;;  %4326 = vmatprep.subr.mxu0 %v4990_v7  ;;  %v1750_v3 = vsub.f32 %v1641_v1, %v1673_v2 }
 0x18e   :  { %4354 = vmatmul.mubr.f32.vlgmr.msra.gmra.mxu1 %v5036_v15  ;;  %4327 = vmatpush3.msra.mxu0 %v4990_v7  ;;  %v1305_v63 = vsub.f32 %v1303_v50, %v1304_v56 }
 0x18f   :  { %4328 = vmatprep.subr.mxu0 %v5000_v11  ;;  %4361 = vmatprep.subr.mxu1 %v4782_v55  ;;  %v1751_v6 = vand.u32 4294901760, %v1750_v3 }
 0x190   :  { %4329 = vmatpush3.msra.mxu0 %v5000_v11  ;;  %4363 = vmatprep.mubr.msk.f32.mxu1 %vm4783_vm3, %v4782_v55  ;;  %v1306_v0 = vand.u32 4294901760, %v1305_v63  ;;  %v5135_v11 = vand.u32 4294901760, %v38_v9 }
 0x191   :  { %4330 = vmatprep.subr.mxu0 %v5006_v13  ;;  %v1752_v7 = vsub.f32 %v1750_v3, %v1751_v6 }
 0x192   :  { %4331 = vmatpush3.msra.mxu0 %v5006_v13  ;;  %4362 = vmatpush3.msra.mxu1 %v1306_v0  ;;  %v37_v13 = vld [vmem:[%s5742_s2 + $0x90] sm:$0xff] }
 0x193   :  { %4332 = vmatprep.subr.mxu0 %v5009_v14  ;;  %4364 = vmatmul.mubr.f32.vlgmr.msra.gmra.mxu1 %v5105_v42  ;;  %v1753_v8 = vand.u32 4294901760, %v1752_v7  ;;  %v5143_v28 = vand.u32 4294901760, %v37_v13 }
 0x194   :  { %4333 = vmatpush3.msra.mxu0 %v5009_v14  ;;  %4371 = vmatprep.subr.mxu1 %v4782_v55  ;;  %v5141_v14 = vsub.f32 %v38_v9, %v5135_v11 }
 0x195   :  { %4335 = vmatmul.mubr.f32.vlgmr.msra.gmra.mxu0 %v5036_v15  ;;  %4356 = vmatprep.subr.mxu0 %v4782_v55  ;;  %v5154_v31 = vsub.f32 %v37_v13, %v5143_v28  ;;  %v5217_v15 = vsub.f32 %v32_v53, %v5200_v60 }
 0x196   :  { %4357 = vmatpush3.msra.mxu0 %v1226_v49  ;;  %4358 = vmatprep.mubr.msk.f32.mxu0 %vm4783_vm3, %v4782_v55  ;;  %v5151_v30 = vand.u32 4294901760, %v5141_v14 }
 0x197   :  { %4366 = vmatprep.subr.mxu0 %v4782_v55  ;;  %4372 = vmatpush3.msra.mxu1 %v1226_v49  ;;  %v5166_v35 = vand.u32 4294901760, %v5154_v31  ;;  %v5232_v21 = vand.u32 4294901760, %v5217_v15 }
 0x198   :  { %4373 = vmatprep.mubr.msk.f32.mxu1 %vm4783_vm3, %v4782_v55  ;;  %4381 = vmatprep.subr.mxu1 %v4782_v55  ;;  %v2207_v34 = vsub.f32 %v5141_v14, %v5151_v30 }
 0x199   :  { %4359 = vmatmul.mubr.f32.vlgmr.msra.gmra.mxu0 %v1265_v57  ;;  %4374 = vmatmul.mubr.f32.vlgmr.msra.gmra.mxu1 %v1263_v45  ;;  %v2214_v43 = vsub.f32 %v5154_v31, %v5166_v35  ;;  %v2249_v39 = vsub.f32 %v5217_v15, %v5232_v21 }
 0x19a   :  { %4367 = vmatpush3.msra.mxu0 %v1303_v50  ;;  %4368 = vmatprep.mubr.msk.f32.mxu0 %vm4783_vm3, %v4782_v55  ;;  %v2208_v40 = vand.u32 4294901760, %v2207_v34 }
 0x19b   :  { %4376 = vmatprep.subr.mxu0 %v4782_v55  ;;  %4382 = vmatpush3.msra.mxu1 %v1226_v49  ;;  %v2215_v62 = vand.u32 4294901760, %v2214_v43  ;;  %v597_v49 = vsub.s32 1, %v5026_v24 }
 0x19c   :  { %4383 = vmatprep.mubr.msk.f32.mxu1 %vm4783_vm3, %v4782_v55  ;;  %4391 = vmatprep.subr.mxu1 %v4782_v55 }
 0x19d   :  { %4369 = vmatmul.mubr.f32.vlgmr.msra.gmra.mxu0 %v1262_v44  ;;  %4384 = vmatmul.mubr.f32.vlgmr.msra.gmra.mxu1 %v5105_v42  ;;  %v598_v51 = vrot.slane %v5032_v26, %v597_v49 }
 0x19e   :  { %4377 = vmatpush3.msra.mxu0 %v1304_v56  ;;  %4378 = vmatprep.mubr.msk.f32.mxu0 %vm4783_vm3, %v4782_v55 }
 0x19f   :  { %4386 = vmatprep.subr.mxu0 %v4782_v55  ;;  %4393 = vmatprep.mubr.msk.f32.mxu1 %vm4783_vm3, %v4782_v55 }
 0x1a0   :  { %4392 = vmatpush3.msra.mxu1 %v1753_v8 }
 0x1a1   :  { %4379 = vmatmul.mubr.f32.vlgmr.msra.gmra.mxu0 %v5105_v42  ;;  %4394 = vmatmul.mubr.f32.vlgmr.msra.gmra.mxu1 %v5105_v42 }
 0x1a2   :  { %4387 = vmatpush3.msra.mxu0 %v1673_v2  ;;  %4388 = vmatprep.mubr.msk.f32.mxu0 %vm4783_vm3, %v4782_v55 }
 0x1a3   :  { %4396 = vmatprep.subr.mxu0 %v4782_v55  ;;  %4401 = vmatprep.subr.mxu1 %v4782_v55 }
 0x1a4   :  { %4402 = vmatpush3.msra.mxu1 %v1673_v2  ;;  %4403 = vmatprep.mubr.msk.f32.mxu1 %vm4783_vm3, %v4782_v55 }
 0x1a5   :  { %4389 = vmatmul.mubr.f32.vlgmr.msra.gmra.mxu0 %v1265_v57  ;;  %4411 = vmatprep.subr.mxu1 %v4782_v55 }
 0x1a6   :  { %4397 = vmatpush3.msra.mxu0 %v1750_v3  ;;  %4398 = vmatprep.mubr.msk.f32.mxu0 %vm4783_vm3, %v4782_v55 }
 0x1a7   :  { %4406 = vmatprep.subr.mxu0 %v4782_v55  ;;  %4404 = vmatmul.mubr.f32.vlgmr.msra.gmra.mxu1 %v1263_v45  ;;  %v2250_v45 = vand.u32 4294901760, %v2249_v39 }
 0x1a8   :  { %4412 = vmatpush3.msra.mxu1 %v1673_v2  ;;  %4413 = vmatprep.mubr.msk.f32.mxu1 %vm4783_vm3, %v4782_v55 }
 0x1a9   :  { %4399 = vmatmul.mubr.f32.vlgmr.msra.gmra.mxu0 %v1262_v44  ;;  %4435 = vmatprep.subr.mxu1 %v2208_v40  ;;  %v2256_v44 = vsub.f32 %v5220_v16, %v5235_v22 }
 0x1aa   :  { %4407 = vmatpush3.msra.mxu0 %v1751_v6  ;;  %4408 = vmatprep.mubr.msk.f32.mxu0 %vm4783_vm3, %v4782_v55 }
 0x1ab   :  { %4414 = vmatmul.mubr.f32.vlgmr.msra.gmra.mxu1 %v5105_v42  ;;  %4416 = vmatprep.subr.mxu0 %v5135_v11  ;;  %v2257_v46 = vand.u32 4294901760, %v2256_v44 }
 0x1ac   :  { %4436 = vmatpush3.msra.mxu1 %v2208_v40 }
 0x1ad   :  { %4409 = vmatmul.mubr.f32.vlgmr.msra.gmra.mxu0 %v5105_v42  ;;  %4437 = vmatprep.subr.mxu1 %v2215_v62  ;;  %v2243_v42 = vand.u32 4294901760, %v2242_v27 }
 0x1ae   :  { %4417 = vmatpush3.msra.mxu0 %v5135_v11  ;;  %4438 = vmatpush3.msra.mxu1 %v2215_v62 }
 0x1af   :  { %4418 = vmatprep.subr.mxu0 %v5143_v28  ;;  %4439 = vmatprep.subr.mxu1 %v2222_v17 }
 0x1b0   :  { %4419 = vmatpush3.msra.mxu0 %v5143_v28  ;;  %4440 = vmatpush3.msra.mxu1 %v2222_v17 }
 0x1b1   :  { %4420 = vmatprep.subr.mxu0 %v5156_v32  ;;  %4441 = vmatprep.subr.mxu1 %v2229_v23 }
 0x1b2   :  { %4421 = vmatpush3.msra.mxu0 %v5156_v32  ;;  %4442 = vmatpush3.msra.mxu1 %v2229_v23 }
 0x1b3   :  { %4422 = vmatprep.subr.mxu0 %v5171_v37  ;;  %4443 = vmatprep.subr.mxu1 %v2236_v41 }
 0x1b4   :  { %4423 = vmatpush3.msra.mxu0 %v5171_v37  ;;  %4444 = vmatpush3.msra.mxu1 %v2236_v41 }
 0x1b5   :  { %4424 = vmatprep.subr.mxu0 %v5196_v58  ;;  %4445 = vmatprep.subr.mxu1 %v2243_v42 }
 0x1b6   :  { %4425 = vmatpush3.msra.mxu0 %v5196_v58  ;;  %4446 = vmatpush3.msra.mxu1 %v2243_v42 }
 0x1b7   :  { %4426 = vmatprep.subr.mxu0 %v5198_v59  ;;  %4447 = vmatprep.subr.mxu1 %v2250_v45 }
 0x1b8   :  { %4427 = vmatpush3.msra.mxu0 %v5198_v59  ;;  %4448 = vmatpush3.msra.mxu1 %v2250_v45 }
 0x1b9   :  { %4428 = vmatprep.subr.mxu0 %v5200_v60  ;;  %4449 = vmatprep.subr.mxu1 %v2257_v46 }
 0x1ba   :  { %4429 = vmatpush3.msra.mxu0 %v5200_v60  ;;  %4450 = vmatpush3.msra.mxu1 %v2257_v46 }
 0x1bb   :  { %4430 = vmatprep.subr.mxu0 %v5202_v61  ;;  %4473 = vmatprep.subr.mxu1 %v5135_v11 }
 0x1bc   :  { %4431 = vmatpush3.msra.mxu0 %v5202_v61 }
 0x1bd   :  { %4454 = vmatprep.subr.mxu0 %v5141_v14 }
 0x22b   :  { %v4279_v55 = vpop.f32.mrf.mxu1 }
 0x22d   :  { %v806_v1 = vpop.f32.mrf.mxu1 }
 0x233   :  { %v4260_v50 = vpop.f32.mrf.mxu0 }
 0x234   :  { %v696_v57 = vadd.f32 %v4260_v50, %v598_v51 }
 0x235   :  { %v685_v56 = vpop.f32.mrf.mxu0 }
 0x236   :  { %v686_v0 = vadd.f32 %v685_v56, %v598_v51  ;;  %v813_v2 = vadd.f32 %v4279_v55, %v696_v57 }
 0x238   :  { %v807_v8 = vadd.f32 %v806_v1, %v686_v0 }
 0x23c   :  { %v4317_v3 = vpop.f32.mrf.mxu1 }
 0x23e   :  { %v988_v13 = vpop.f32.mrf.mxu1 }
 0x244   :  { %v4298_v63 = vpop.f32.mrf.mxu0 }
 0x245   :  { %v908_v7 = vadd.f32 %v4298_v63, %v813_v2 }
 0x246   :  { %v900_v6 = vpop.f32.mrf.mxu0 }
 0x247   :  { %v901_v9 = vadd.f32 %v900_v6, %v807_v8  ;;  %v997_v29 = vadd.f32 %v4317_v3, %v908_v7 }
 0x249   :  { %v989_v40 = vadd.f32 %v988_v13, %v901_v9 }
 0x24e   :  { %v4355_v33 = vpop.f32.mrf.mxu1 }
 0x250   :  { %v1176_v53 = vpop.f32.mrf.mxu1 }
 0x253   :  { %v1343_v55 = vpop.f32.mrf.mxu1 }
 0x255   :  { %v4336_v34 = vpop.f32.mrf.mxu0  ;;  %v4365_v57 = vpop.f32.mrf.mxu1 }
 0x256   :  { %v1098_v38 = vadd.f32 %v4336_v34, %v997_v29 }
 0x257   :  { %v1091_v43 = vpop.f32.mrf.mxu0 }
 0x258   :  { %v1183_v26 = vadd.f32 %v4355_v33, %v1098_v38  ;;  %v1092_v52 = vadd.f32 %v1091_v43, %v989_v40 }
 0x259   :  { %v1267_v46 = vpop.f32.mrf.mxu0  ;;  %v1491_v1 = vpop.f32.mrf.mxu1 }
 0x25a   :  { %4767 = vtanh.f32 %v1183_v26  ;;  %v1177_v54 = vadd.f32 %v1176_v53, %v1092_v52  ;;  %v1344_v56 = vadd.f32 %v1343_v55, %v1267_v46 }
 0x25b   :  { %v4360_v50 = vpop.f32.mrf.mxu0 }
 0x25c   :  { %4769 = vtanh.f32 %v1177_v54  ;;  %v42_v54 = vld [vmem:[%s5742_s2 + $0xb8] sm:$0xff] }
 0x25d   :  { %v1417_v63 = vpop.f32.mrf.mxu0 }
 0x25e   :  { %v1418_v0 = vadd.f32 %v1417_v63, %v1344_v56 }
 0x25f   :  { %v4370_v2 = vpop.f32.mrf.mxu0 }
 0x260   :  { %v1492_v3 = vadd.f32 %v1491_v1, %v1418_v0 }
 0x261   :  { %v1565_v6 = vpop.f32.mrf.mxu0 }
 0x262   :  { %v1566_v7 = vadd.f32 %v1565_v6, %v1492_v3 }
 0x263   :  { %v4380_v8 = vpop.f32.mrf.mxu0 }
 0x265   :  { %v1714_v13 = vpop.f32.mrf.mxu0 }
 0x267   :  { %v4768_v62 = vpop.eup %4767  ;;  %v4390_v29 = vpop.f32.mrf.mxu0 }
 0x268   :  { %v2092_v4 = vsel %vm599_vm1, %v4768_v62, 0 }
 0x269   :  { %v4770_v17 = vpop.eup %4769  ;;  %v5257_v18 = vand.u32 4294901760, %v2092_v4  ;;  %v1864_v38 = vpop.f32.mrf.mxu0 }
 0x26a   :  { %v2089_v23 = vsel %vm599_vm1, %v4770_v17, 0 }
 0x26b   :  { %v5260_v25 = vand.u32 4294901760, %v2089_v23  ;;  %v5263_v27 = vsub.f32 %v2092_v4, %v5257_v18  ;;  %v4400_v40 = vpop.f32.mrf.mxu0 }
 0x26d   :  { %4451 = vmatprep.mubr.f32.mxu1 %v5260_v25  ;;  %v2168_v39 = vsub.f32 %v2089_v23, %v5260_v25  ;;  %v2179_v41 = vand.u32 4294901760, %v5263_v27  ;;  %v2012_v43 = vpop.f32.mrf.mxu0  ;;  %v41_v23 = vld [vmem:[%s5742_s2 + $0xb0] sm:$0xff] }
 0x26e   :  { %4452 = vmatmul.mubr.f32.vlgmr.msra.gmra.mxu1 %v5257_v18 }
 0x26f   :  { %4474 = vmatpush3.msra.mxu1 %v5135_v11  ;;  %v2169_v42 = vand.u32 4294901760, %v2168_v39  ;;  %v2180_v44 = vsub.f32 %v5263_v27, %v2179_v41  ;;  %v4410_v26 = vpop.f32.mrf.mxu0 }
 0x270   :  { %4475 = vmatprep.subr.mxu1 %v5143_v28 }
 0x271   :  { %4476 = vmatpush3.msra.mxu1 %v5143_v28  ;;  %4489 = vmatprep.mubr.f32.mxu1 %v2169_v42  ;;  %v2170_v45 = vsub.f32 %v2168_v39, %v2169_v42  ;;  %v2181_v51 = vand.u32 4294901760, %v2180_v44 }
 0x272   :  { %4477 = vmatprep.subr.mxu1 %v5156_v32 }
 0x273   :  { %4478 = vmatpush3.msra.mxu1 %v5156_v32  ;;  %v2171_v49 = vand.u32 4294901760, %v2170_v45 }
 0x274   :  { %4479 = vmatprep.subr.mxu1 %v5171_v37 }
 0x275   :  { %4480 = vmatpush3.msra.mxu1 %v5171_v37  ;;  %4432 = vmatprep.mubr.f32.mxu0 %v2171_v49 }
 0x276   :  { %4481 = vmatprep.subr.mxu1 %v5196_v58  ;;  %4433 = vmatmul.mubr.f32.vlgmr.msra.gmra.mxu0 %v2181_v51 }
 0x277   :  { %4455 = vmatpush3.msra.mxu0 %v5141_v14  ;;  %4482 = vmatpush3.msra.mxu1 %v5196_v58  ;;  %v4375_v14 = vpop.f32.mrf.mxu1 }
 0x278   :  { %4456 = vmatprep.subr.mxu0 %v5154_v31  ;;  %4470 = vmatprep.mubr.f32.mxu0 %v2168_v39  ;;  %v5405_v39 = vand.u32 4294901760, %v42_v54 }
 0x279   :  { %4483 = vmatprep.subr.mxu1 %v5198_v59  ;;  %4457 = vmatpush3.msra.mxu0 %v5154_v31  ;;  %v1637_v31 = vpop.f32.mrf.mxu1 }
 0x27a   :  { %4484 = vmatpush3.msra.mxu1 %v5198_v59  ;;  %4458 = vmatprep.subr.mxu0 %v5169_v36  ;;  %v5293_v9 = vadd.f32 %v1637_v31, %v1566_v7  ;;  %v5420_v50 = vsub.f32 %v42_v54, %v5405_v39 }
 0x27b   :  { %4485 = vmatprep.subr.mxu1 %v5200_v60  ;;  %4459 = vmatpush3.msra.mxu0 %v5169_v36  ;;  %v4385_v36 = vpop.f32.mrf.mxu1 }
 0x27c   :  { %4486 = vmatpush3.msra.mxu1 %v5200_v60  ;;  %4460 = vmatprep.subr.mxu0 %v5184_v48  ;;  %v5435_v0 = vand.u32 4294901760, %v5420_v50 }
 0x27d   :  { %4487 = vmatprep.subr.mxu1 %v5202_v61  ;;  %4461 = vmatpush3.msra.mxu0 %v5184_v48  ;;  %v1790_v48 = vpop.f32.mrf.mxu1 }
 0x27e   :  { %4488 = vmatpush3.msra.mxu1 %v5202_v61  ;;  %4462 = vmatprep.subr.mxu0 %v5211_v10  ;;  %v1791_v33 = vadd.f32 %v1790_v48, %v1714_v13  ;;  %v2833_v6 = vsub.f32 %v5420_v50, %v5435_v0 }
 0x27f   :  { %4490 = vmatmul.mubr.f32.vlgmr.msra.gmra.mxu1 %v2179_v41  ;;  %4511 = vmatprep.subr.mxu1 %v5135_v11  ;;  %v4395_v34 = vpop.f32.mrf.mxu1  ;;  %v5407_v41 = vand.u32 4294901760, %v41_v23 }
 0x280   :  { %4463 = vmatpush3.msra.mxu0 %v5211_v10  ;;  %4512 = vmatpush3.msra.mxu1 %v5135_v11  ;;  %v1865_v11 = vadd.f32 %v1864_v38, %v1791_v33  ;;  %v2834_v8 = vand.u32 4294901760, %v2833_v6 }
 0x281   :  { %4527 = vmatprep.mubr.f32.mxu1 %v5260_v25  ;;  %4464 = vmatprep.subr.mxu0 %v5214_v12  ;;  %v1938_v10 = vpop.f32.mrf.mxu1  ;;  %v5423_v51 = vsub.f32 %v41_v23, %v5407_v41 }
 0x282   :  { %4513 = vmatprep.subr.mxu1 %v5143_v28  ;;  %4465 = vmatpush3.msra.mxu0 %v5214_v12 }
 0x283   :  { %4514 = vmatpush3.msra.mxu1 %v5143_v28  ;;  %4466 = vmatprep.subr.mxu0 %v5217_v15  ;;  %v1939_v28 = vadd.f32 %v1938_v10, %v1865_v11  ;;  %v4405_v12 = vpop.f32.mrf.mxu1  ;;  %v5438_v1 = vand.u32 4294901760, %v5423_v51 }
 0x284   :  { %4515 = vmatprep.subr.mxu1 %v5156_v32  ;;  %4467 = vmatpush3.msra.mxu0 %v5217_v15 }
 0x285   :  { %4516 = vmatpush3.msra.mxu1 %v5156_v32  ;;  %4468 = vmatprep.subr.mxu0 %v5220_v16  ;;  %v2013_v32 = vadd.f32 %v2012_v43, %v1939_v28  ;;  %v2084_v15 = vpop.f32.mrf.mxu1  ;;  %v2840_v7 = vsub.f32 %v5423_v51, %v5438_v1 }
 0x286   :  { %4517 = vmatprep.subr.mxu1 %v5171_v37  ;;  %4469 = vmatpush3.msra.mxu0 %v5220_v16 }
 0x287   :  { %4518 = vmatpush3.msra.mxu1 %v5171_v37  ;;  %4471 = vmatmul.mubr.f32.vlgmr.msra.gmra.mxu0 %v5263_v27  ;;  %v5318_v37 = vadd.f32 %v2084_v15, %v2013_v32  ;;  %v4415_v16 = vpop.f32.mrf.mxu1  ;;  %v39_v27 = vld [vmem:[%s5742_s2 + $0xa0] sm:$0xff]  ;;  %v2841_v36 = vand.u32 4294901760, %v2840_v7 }
 0x288   :  { %4492 = vmatprep.subr.mxu0 %v5151_v30  ;;  %4519 = vmatprep.subr.mxu1 %v5196_v58  ;;  %v5411_v44 = vand.u32 4294901760, %v39_v27 }
 0x289   :  { %4493 = vmatpush3.msra.mxu0 %v5151_v30  ;;  %4508 = vmatprep.mubr.f32.mxu0 %v5260_v25  ;;  %v46_v30 = vld [vmem:[%s5742_s2 + $0xd8] sm:$0xff]  ;;  %v40_v25 = vld [vmem:[%s5742_s2 + $0xa8] sm:$0xff] }
 0x28a   :  { %4520 = vmatpush3.msra.mxu1 %v5196_v58  ;;  %4494 = vmatprep.subr.mxu0 %v5166_v35  ;;  %v5409_v42 = vand.u32 4294901760, %v40_v25  ;;  %v5429_v56 = vsub.f32 %v39_v27, %v5411_v44 }
 0x28b   :  { %4521 = vmatprep.subr.mxu1 %v5198_v59  ;;  %4495 = vmatpush3.msra.mxu0 %v5166_v35  ;;  %v5344_v35 = vand.u32 4294901760, %v46_v30 }
 0x28c   :  { %4522 = vmatpush3.msra.mxu1 %v5198_v59  ;;  %4496 = vmatprep.subr.mxu0 %v5181_v47  ;;  %v5426_v55 = vsub.f32 %v40_v25, %v5409_v42  ;;  %v5444_v3 = vand.u32 4294901760, %v5429_v56 }
 0x28d   :  { %4523 = vmatprep.subr.mxu1 %v5200_v60  ;;  %4497 = vmatpush3.msra.mxu0 %v5181_v47  ;;  %v45_v47 = vld [vmem:[%s5742_s2 + $0xd0] sm:$0xff]  ;;  %v5350_v58 = vsub.f32 %v46_v30, %v5344_v35  ;;  %v2676_v30 = vsub.s32 2, %v5026_v24 }
 0x28e   :  { %4524 = vmatpush3.msra.mxu1 %v5200_v60  ;;  %4498 = vmatprep.subr.mxu0 %v5208_v5  ;;  %v5352_v59 = vand.u32 4294901760, %v45_v47  ;;  %v44_v60 = vld [vmem:[%s5742_s2 + $0xc8] sm:$0xff]  ;;  %v5441_v2 = vand.u32 4294901760, %v5426_v55  ;;  %v2854_v13 = vsub.f32 %v5429_v56, %v5444_v3 }
 0x28f   :  { %4525 = vmatprep.subr.mxu1 %v5202_v61  ;;  %4499 = vmatpush3.msra.mxu0 %v5208_v5 }
 0x290   :  { %4526 = vmatpush3.msra.mxu1 %v5202_v61  ;;  %4500 = vmatprep.subr.mxu0 %v5226_v19  ;;  %v5360_v61 = vand.u32 4294901760, %v5350_v58  ;;  %v5363_v5 = vsub.f32 %v45_v47, %v5352_v59  ;;  %v2847_v31 = vsub.f32 %v5426_v55, %v5441_v2  ;;  %v2855_v29 = vand.u32 4294901760, %v2854_v13 }
 0x291   :  { %4528 = vmatmul.mubr.f32.vlgmr.msra.gmra.mxu1 %v5257_v18  ;;  %4501 = vmatpush3.msra.mxu0 %v5226_v19  ;;  %v5365_v19 = vand.u32 4294901760, %v44_v60 }
 0x292   :  { %4502 = vmatprep.subr.mxu0 %v5229_v20  ;;  %v2848_v48 = vand.u32 4294901760, %v2847_v31 }
 0x293   :  { %4503 = vmatpush3.msra.mxu0 %v5229_v20  ;;  %v43_v20 = vld [vmem:[%s5742_s2 + $0xc0] sm:$0xff]  ;;  %v5378_v52 = vsub.f32 %v44_v60, %v5365_v19 }
 0x294   :  { %4504 = vmatprep.subr.mxu0 %v5232_v21  ;;  %v5380_v53 = vand.u32 4294901760, %v43_v20 }
 0x295   :  { %4505 = vmatpush3.msra.mxu0 %v5232_v21  ;;  %v2805_v21 = vsub.f32 %v5350_v58, %v5360_v61  ;;  %v5390_v17 = vand.u32 4294901760, %v5378_v52 }
 0x296   :  { %4506 = vmatprep.subr.mxu0 %v5235_v22 }
 0x297   :  { %4507 = vmatpush3.msra.mxu0 %v5235_v22  ;;  %v5375_v22 = vand.u32 4294901760, %v5363_v5  ;;  %v2806_v62 = vand.u32 4294901760, %v2805_v21  ;;  %v2819_v46 = vsub.f32 %v5378_v52, %v5390_v17 }
 0x298   :  { %4509 = vmatmul.mubr.f32.vlgmr.msra.gmra.mxu0 %v5257_v18  ;;  %4530 = vmatprep.subr.mxu0 %v5344_v35  ;;  %v5393_v18 = vsub.f32 %v43_v20, %v5380_v53 }
 0x299   :  { %4531 = vmatpush3.msra.mxu0 %v5344_v35  ;;  %v2812_v4 = vsub.f32 %v5363_v5, %v5375_v22  ;;  %4549 = vmatprep.subr.mxu1 %v2806_v62  ;;  %v2820_v57 = vand.u32 4294901760, %v2819_v46 }
 0x29a   :  { %4532 = vmatprep.subr.mxu0 %v5352_v59  ;;  %v5417_v49 = vand.u32 4294901760, %v5393_v18  ;;  %4550 = vmatpush3.msra.mxu1 %v2806_v62 }
 0x29b   :  { %4533 = vmatpush3.msra.mxu0 %v5352_v59  ;;  %v2813_v45 = vand.u32 4294901760, %v2812_v4 }
 0x29c   :  { %4534 = vmatprep.subr.mxu0 %v5365_v19  ;;  %v2826_v63 = vsub.f32 %v5393_v18, %v5417_v49 }
 0x29d   :  { %4535 = vmatpush3.msra.mxu0 %v5365_v19  ;;  %4551 = vmatprep.subr.mxu1 %v2813_v45 }
 0x29e   :  { %4536 = vmatprep.subr.mxu0 %v5380_v53  ;;  %4552 = vmatpush3.msra.mxu1 %v2813_v45  ;;  %v2827_v14 = vand.u32 4294901760, %v2826_v63 }
 0x29f   :  { %4537 = vmatpush3.msra.mxu0 %v5380_v53  ;;  %4553 = vmatprep.subr.mxu1 %v2820_v57 }
 0x2a0   :  { %4538 = vmatprep.subr.mxu0 %v5405_v39  ;;  %4554 = vmatpush3.msra.mxu1 %v2820_v57 }
 0x2a1   :  { %4539 = vmatpush3.msra.mxu0 %v5405_v39  ;;  %4555 = vmatprep.subr.mxu1 %v2827_v14 }
 0x2a2   :  { %4540 = vmatprep.subr.mxu0 %v5407_v41  ;;  %4556 = vmatpush3.msra.mxu1 %v2827_v14 }
 0x2a3   :  { %4541 = vmatpush3.msra.mxu0 %v5407_v41  ;;  %4557 = vmatprep.subr.mxu1 %v2834_v8 }
 0x2a4   :  { %4542 = vmatprep.subr.mxu0 %v5409_v42  ;;  %4558 = vmatpush3.msra.mxu1 %v2834_v8 }
 0x2a5   :  { %4543 = vmatpush3.msra.mxu0 %v5409_v42  ;;  %4559 = vmatprep.subr.mxu1 %v2841_v36 }
 0x2a6   :  { %4544 = vmatprep.subr.mxu0 %v5411_v44  ;;  %4560 = vmatpush3.msra.mxu1 %v2841_v36 }
 0x2a7   :  { %4545 = vmatpush3.msra.mxu0 %v5411_v44  ;;  %4561 = vmatprep.subr.mxu1 %v2848_v48 }
 0x2a8   :  { %4568 = vmatprep.subr.mxu0 %v5350_v58  ;;  %4562 = vmatpush3.msra.mxu1 %v2848_v48 }
 0x2a9   :  { %4563 = vmatprep.subr.mxu1 %v2855_v29 }
 0x2aa   :  { %4564 = vmatpush3.msra.mxu1 %v2855_v29 }
 0x2ab   :  { %4587 = vmatprep.subr.mxu1 %v5344_v35 }
 0x32e   :  { %v4453_v34 = vpop.f32.mrf.mxu1 }
 0x330   :  { %v2294_v28 = vpop.f32.mrf.mxu1 }
 0x336   :  { %v4434_v33 = vpop.f32.mrf.mxu0 }
 0x337   :  { %v2184_v11 = vadd.f32 %v4434_v33, %v5318_v37  ;;  %v5469_v37 = vld [vmem:[%s5742_s2 + $0x130] sm:$0xff] }
 0x338   :  { %v2173_v38 = vpop.f32.mrf.mxu0 }
 0x339   :  { %v2174_v40 = vadd.f32 %v2173_v38, %v5293_v9  ;;  %v2301_v12 = vadd.f32 %v4453_v34, %v2184_v11  ;;  %v2677_v9 = vrot.slane %v5469_v37, %v2676_v30 }
 0x33b   :  { %v2295_v26 = vadd.f32 %v2294_v28, %v2174_v40 }
 0x33f   :  { %v4491_v43 = vpop.f32.mrf.mxu1 }
 0x341   :  { %v2476_v47 = vpop.f32.mrf.mxu1 }
 0x347   :  { %v4472_v10 = vpop.f32.mrf.mxu0 }
 0x348   :  { %v2396_v15 = vadd.f32 %v4472_v10, %v2301_v12 }
 0x349   :  { %v2388_v32 = vpop.f32.mrf.mxu0 }
 0x34a   :  { %v2389_v16 = vadd.f32 %v2388_v32, %v2295_v26  ;;  %v2485_v60 = vadd.f32 %v4491_v43, %v2396_v15 }
 0x34c   :  { %v2477_v62 = vadd.f32 %v2476_v47, %v2389_v16 }
 0x351   :  { %v4529_v20 = vpop.f32.mrf.mxu1 }
 0x353   :  { %v2664_v27 = vpop.f32.mrf.mxu1 }
 0x358   :  { %v4510_v21 = vpop.f32.mrf.mxu0 }
 0x359   :  { %v2586_v54 = vadd.f32 %v4510_v21, %v2485_v60 }
 0x35a   :  { %v2579_v4 = vpop.f32.mrf.mxu0 }
 0x35b   :  { %v2671_v23 = vadd.f32 %v4529_v20, %v2586_v54  ;;  %v2580_v25 = vadd.f32 %v2579_v4, %v2477_v62 }
 0x35d   :  { %v2679_v45 = vadd.f32 %v2677_v9, %v2671_v23  ;;  %v2665_v46 = vadd.f32 %v2664_v27, %v2580_v25 }
 0x35f   :  { %4771 = vtanh.f32 %v2679_v45  ;;  %v2678_v57 = vadd.f32 %v2677_v9, %v2665_v46 }
 0x361   :  { %4773 = vtanh.f32 %v2678_v57 }
 0x36c   :  { %v4772_v63 = vpop.eup %4771 }
 0x36d   :  { %v2690_v14 = vsel %vm599_vm1, %v4772_v63, 0  ;;  %v2684_v63 = vsub.s32 3, %v5026_v24 }
 0x36e   :  { %v4774_v6 = vpop.eup %4773  ;;  %v5473_v7 = vand.u32 4294901760, %v2690_v14 }
 0x36f   :  { %v2687_v31 = vsel %vm599_vm1, %v4774_v6, 0  ;;  %v2685_v6 = vrot.slane %v5469_v37, %v2684_v63 }
 0x370   :  { %v2765_v8 = vand.u32 4294901760, %v2687_v31  ;;  %v2776_v36 = vsub.f32 %v2690_v14, %v5473_v7 }
 0x372   :  { %4565 = vmatprep.mubr.f32.mxu1 %v2765_v8  ;;  %v2766_v13 = vsub.f32 %v2687_v31, %v2765_v8  ;;  %v2777_v48 = vand.u32 4294901760, %v2776_v36 }
 0x373   :  { %4566 = vmatmul.mubr.f32.vlgmr.msra.gmra.mxu1 %v5473_v7 }
 0x374   :  { %4588 = vmatpush3.msra.mxu1 %v5344_v35  ;;  %v2767_v29 = vand.u32 4294901760, %v2766_v13  ;;  %v2778_v33 = vsub.f32 %v2776_v36, %v2777_v48 }
 0x375   :  { %4589 = vmatprep.subr.mxu1 %v5352_v59 }
 0x376   :  { %4590 = vmatpush3.msra.mxu1 %v5352_v59  ;;  %4603 = vmatprep.mubr.f32.mxu1 %v2767_v29  ;;  %v2768_v34 = vsub.f32 %v2766_v13, %v2767_v29  ;;  %v2779_v11 = vand.u32 4294901760, %v2778_v33 }
 0x377   :  { %4591 = vmatprep.subr.mxu1 %v5365_v19 }
 0x378   :  { %4592 = vmatpush3.msra.mxu1 %v5365_v19  ;;  %v2769_v38 = vand.u32 4294901760, %v2768_v34 }
 0x379   :  { %4593 = vmatprep.subr.mxu1 %v5380_v53 }
 0x37a   :  { %4594 = vmatpush3.msra.mxu1 %v5380_v53  ;;  %4546 = vmatprep.mubr.f32.mxu0 %v2769_v38 }
 0x37b   :  { %4595 = vmatprep.subr.mxu1 %v5405_v39  ;;  %4547 = vmatmul.mubr.f32.vlgmr.msra.gmra.mxu0 %v2779_v11 }
 0x37c   :  { %4569 = vmatpush3.msra.mxu0 %v5350_v58  ;;  %4596 = vmatpush3.msra.mxu1 %v5405_v39 }
 0x37d   :  { %4570 = vmatprep.subr.mxu0 %v5363_v5  ;;  %4584 = vmatprep.mubr.f32.mxu0 %v2766_v13 }
 0x37e   :  { %4597 = vmatprep.subr.mxu1 %v5407_v41  ;;  %4571 = vmatpush3.msra.mxu0 %v5363_v5 }
 0x37f   :  { %4598 = vmatpush3.msra.mxu1 %v5407_v41  ;;  %4572 = vmatprep.subr.mxu0 %v5378_v52 }
 0x380   :  { %4599 = vmatprep.subr.mxu1 %v5409_v42  ;;  %4573 = vmatpush3.msra.mxu0 %v5378_v52 }
 0x381   :  { %4600 = vmatpush3.msra.mxu1 %v5409_v42  ;;  %4574 = vmatprep.subr.mxu0 %v5393_v18 }
 0x382   :  { %4601 = vmatprep.subr.mxu1 %v5411_v44  ;;  %4575 = vmatpush3.msra.mxu0 %v5393_v18 }
 0x383   :  { %4602 = vmatpush3.msra.mxu1 %v5411_v44  ;;  %4576 = vmatprep.subr.mxu0 %v5420_v50 }
 0x384   :  { %4604 = vmatmul.mubr.f32.vlgmr.msra.gmra.mxu1 %v2777_v48  ;;  %4625 = vmatprep.subr.mxu1 %v5344_v35 }
 0x385   :  { %4577 = vmatpush3.msra.mxu0 %v5420_v50  ;;  %4626 = vmatpush3.msra.mxu1 %v5344_v35  ;;  %v54_v35 = vld [vmem:[%s5742_s2 + $0x118] sm:$0xff] }
 0x386   :  { %4641 = vmatprep.mubr.f32.mxu1 %v2765_v8  ;;  %4578 = vmatprep.subr.mxu0 %v5423_v51  ;;  %v5545_v58 = vand.u32 4294901760, %v54_v35 }
 0x387   :  { %4627 = vmatprep.subr.mxu1 %v5352_v59  ;;  %4579 = vmatpush3.msra.mxu0 %v5423_v51 }
 0x388   :  { %4628 = vmatpush3.msra.mxu1 %v5352_v59  ;;  %4580 = vmatprep.subr.mxu0 %v5426_v55  ;;  %v53_v59 = vld [vmem:[%s5742_s2 + $0x110] sm:$0xff] }
 0x389   :  { %4629 = vmatprep.subr.mxu1 %v5365_v19  ;;  %4581 = vmatpush3.msra.mxu0 %v5426_v55  ;;  %v5553_v5 = vand.u32 4294901760, %v53_v59 }
 0x38a   :  { %4630 = vmatpush3.msra.mxu1 %v5365_v19  ;;  %4582 = vmatprep.subr.mxu0 %v5429_v56  ;;  %v52_v19 = vld [vmem:[%s5742_s2 + $0x108] sm:$0xff] }
 0x38b   :  { %4631 = vmatprep.subr.mxu1 %v5380_v53  ;;  %4583 = vmatpush3.msra.mxu0 %v5429_v56  ;;  %v5564_v52 = vsub.f32 %v53_v59, %v5553_v5  ;;  %v49_v56 = vld [vmem:[%s5742_s2 + $0xf0] sm:$0xff] }
 0x38c   :  { %4632 = vmatpush3.msra.mxu1 %v5380_v53  ;;  %4585 = vmatmul.mubr.f32.vlgmr.msra.gmra.mxu0 %v2776_v36  ;;  %v5566_v53 = vand.u32 4294901760, %v52_v19 }
 0x38d   :  { %4606 = vmatprep.subr.mxu0 %v5360_v61  ;;  %4633 = vmatprep.subr.mxu1 %v5405_v39 }
 0x38e   :  { %4607 = vmatpush3.msra.mxu0 %v5360_v61  ;;  %4622 = vmatprep.mubr.f32.mxu0 %v2765_v8  ;;  %v5551_v61 = vsub.f32 %v54_v35, %v5545_v58 }
 0x38f   :  { %4634 = vmatpush3.msra.mxu1 %v5405_v39  ;;  %4608 = vmatprep.subr.mxu0 %v5375_v22  ;;  %v5576_v39 = vand.u32 4294901760, %v5564_v52 }
 0x390   :  { %4635 = vmatprep.subr.mxu1 %v5407_v41  ;;  %4609 = vmatpush3.msra.mxu0 %v5375_v22  ;;  %v5561_v22 = vand.u32 4294901760, %v5551_v61 }
 0x391   :  { %4636 = vmatpush3.msra.mxu1 %v5407_v41  ;;  %4610 = vmatprep.subr.mxu0 %v5390_v17  ;;  %v5579_v41 = vsub.f32 %v52_v19, %v5566_v53  ;;  %v3404_v50 = vsub.f32 %v5564_v52, %v5576_v39 }
 0x392   :  { %4637 = vmatprep.subr.mxu1 %v5409_v42  ;;  %4611 = vmatpush3.msra.mxu0 %v5390_v17  ;;  %v51_v17 = vld [vmem:[%s5742_s2 + $0x100] sm:$0xff]  ;;  %v3397_v18 = vsub.f32 %v5551_v61, %v5561_v22 }
 0x393   :  { %4638 = vmatpush3.msra.mxu1 %v5409_v42  ;;  %4612 = vmatprep.subr.mxu0 %v5417_v49  ;;  %v5581_v42 = vand.u32 4294901760, %v51_v17  ;;  %v5591_v51 = vand.u32 4294901760, %v5579_v41  ;;  %v3405_v28 = vand.u32 4294901760, %v3404_v50 }
 0x394   :  { %4639 = vmatprep.subr.mxu1 %v5411_v44  ;;  %4613 = vmatpush3.msra.mxu0 %v5417_v49  ;;  %v3398_v49 = vand.u32 4294901760, %v3397_v18 }
 0x395   :  { %4640 = vmatpush3.msra.mxu1 %v5411_v44  ;;  %4614 = vmatprep.subr.mxu0 %v5435_v0  ;;  %v50_v44 = vld [vmem:[%s5742_s2 + $0xf8] sm:$0xff]  ;;  %v5594_v55 = vsub.f32 %v51_v17, %v5581_v42  ;;  %v3411_v12 = vsub.f32 %v5579_v41, %v5591_v51 }
 0x396   :  { %4642 = vmatmul.mubr.f32.vlgmr.msra.gmra.mxu1 %v5473_v7  ;;  %4615 = vmatpush3.msra.mxu0 %v5435_v0  ;;  %v48_v0 = vld [vmem:[%s5742_s2 + $0xe8] sm:$0xff] }
 0x397   :  { %4616 = vmatprep.subr.mxu0 %v5438_v1  ;;  %v5610_v10 = vand.u32 4294901760, %v48_v0  ;;  %4663 = vmatprep.subr.mxu1 %v3398_v49  ;;  %v5618_v43 = vand.u32 4294901760, %v5594_v55  ;;  %v3412_v30 = vand.u32 4294901760, %v3411_v12 }
 0x398   :  { %4617 = vmatpush3.msra.mxu0 %v5438_v1  ;;  %v47_v1 = vld [vmem:[%s5742_s2 + $0xe0] sm:$0xff]  ;;  %4664 = vmatpush3.msra.mxu1 %v3398_v49  ;;  %s4784_s2 = smov 2  }
 0x399   :  { %4618 = vmatprep.subr.mxu0 %v5441_v2  ;;  %v5612_v40 = vand.u32 4294901760, %v47_v1  ;;  %v5627_v26 = vsub.f32 %v48_v0, %v5610_v10  ;;  %4665 = vmatprep.subr.mxu1 %v3405_v28  ;;  %v3418_v47 = vsub.f32 %v5594_v55, %v5618_v43 }
 0x39a   :  { %4619 = vmatpush3.msra.mxu0 %v5441_v2  ;;  %v5606_v2 = vand.u32 4294901760, %v50_v44  ;;  %4666 = vmatpush3.msra.mxu1 %v3405_v28 }
 0x39b   :  { %4620 = vmatprep.subr.mxu0 %v5444_v3  ;;  %v5630_v16 = vsub.f32 %v47_v1, %v5612_v40  ;;  %v5642_v21 = vand.u32 4294901760, %v5627_v26  ;;  %4667 = vmatprep.subr.mxu1 %v3412_v30  ;;  %v3419_v9 = vand.u32 4294901760, %v3418_v47 }
 0x39c   :  { %4621 = vmatpush3.msra.mxu0 %v5444_v3  ;;  %v5608_v3 = vand.u32 4294901760, %v49_v56  ;;  %v5621_v32 = vsub.f32 %v50_v44, %v5606_v2  ;;  %4668 = vmatpush3.msra.mxu1 %v3412_v30 }
 0x39d   :  { %4623 = vmatmul.mubr.f32.vlgmr.msra.gmra.mxu0 %v5473_v7  ;;  %4644 = vmatprep.subr.mxu0 %v5545_v58  ;;  %v5645_v54 = vand.u32 4294901760, %v5630_v16  ;;  %v3439_v23 = vsub.f32 %v5627_v26, %v5642_v21 }
 0x39e   :  { %4645 = vmatpush3.msra.mxu0 %v5545_v58  ;;  %v5624_v15 = vsub.f32 %v49_v56, %v5608_v3  ;;  %v5636_v60 = vand.u32 4294901760, %v5621_v32  ;;  %4669 = vmatprep.subr.mxu1 %v3419_v9 }
 0x39f   :  { %4646 = vmatprep.subr.mxu0 %v5553_v5  ;;  %4670 = vmatpush3.msra.mxu1 %v3419_v9  ;;  %v3446_v45 = vsub.f32 %v5630_v16, %v5645_v54  ;;  %v3440_v46 = vand.u32 4294901760, %v3439_v23 }
 0x3a0   :  { %4647 = vmatpush3.msra.mxu0 %v5553_v5  ;;  %v5639_v20 = vand.u32 4294901760, %v5624_v15  ;;  %v3425_v62 = vsub.f32 %v5621_v32, %v5636_v60 }
 0x3a1   :  { %4648 = vmatprep.subr.mxu0 %v5566_v53  ;;  %v3447_v57 = vand.u32 4294901760, %v3446_v45 }
 0x3a2   :  { %4649 = vmatpush3.msra.mxu0 %v5566_v53  ;;  %v3432_v4 = vsub.f32 %v5624_v15, %v5639_v20  ;;  %v3426_v25 = vand.u32 4294901760, %v3425_v62 }
 0x3a3   :  { %4650 = vmatprep.subr.mxu0 %v5581_v42 }
 0x3a4   :  { %4651 = vmatpush3.msra.mxu0 %v5581_v42  ;;  %v3433_v27 = vand.u32 4294901760, %v3432_v4  ;;  %4671 = vmatprep.subr.mxu1 %v3426_v25 }
 0x3a5   :  { %4652 = vmatprep.subr.mxu0 %v5606_v2  ;;  %4672 = vmatpush3.msra.mxu1 %v3426_v25 }
 0x3a6   :  { %4653 = vmatpush3.msra.mxu0 %v5606_v2  ;;  %4673 = vmatprep.subr.mxu1 %v3433_v27 }
 0x3a7   :  { %4654 = vmatprep.subr.mxu0 %v5608_v3  ;;  %4674 = vmatpush3.msra.mxu1 %v3433_v27 }
 0x3a8   :  { %4655 = vmatpush3.msra.mxu0 %v5608_v3  ;;  %4675 = vmatprep.subr.mxu1 %v3440_v46 }
 0x3a9   :  { %4656 = vmatprep.subr.mxu0 %v5610_v10  ;;  %4676 = vmatpush3.msra.mxu1 %v3440_v46 }
 0x3aa   :  { %4657 = vmatpush3.msra.mxu0 %v5610_v10  ;;  %4677 = vmatprep.subr.mxu1 %v3447_v57 }
 0x3ab   :  { %4658 = vmatprep.subr.mxu0 %v5612_v40  ;;  %4678 = vmatpush3.msra.mxu1 %v3447_v57 }
 0x3ac   :  { %4659 = vmatpush3.msra.mxu0 %v5612_v40  ;;  %4701 = vmatprep.subr.mxu1 %v5545_v58 }
 0x3ad   :  { %4682 = vmatprep.subr.mxu0 %v5551_v61 }
 0x433   :  { %v4567_v7 = vpop.f32.mrf.mxu1 }
 0x435   :  { %v2892_v48 = vpop.f32.mrf.mxu1 }
 0x43b   :  { %v4548_v14 = vpop.f32.mrf.mxu0 }
 0x43c   :  { %v2782_v8 = vadd.f32 %v4548_v14, %v2685_v6 }
 0x43d   :  { %v2771_v31 = vpop.f32.mrf.mxu0 }
 0x43e   :  { %v2772_v13 = vadd.f32 %v2771_v31, %v2685_v6  ;;  %v2899_v29 = vadd.f32 %v4567_v7, %v2782_v8 }
 0x440   :  { %v2893_v11 = vadd.f32 %v2892_v48, %v2772_v13 }
 0x444   :  { %v4605_v33 = vpop.f32.mrf.mxu1 }
 0x446   :  { %v3074_v59 = vpop.f32.mrf.mxu1 }
 0x44c   :  { %v4586_v36 = vpop.f32.mrf.mxu0 }
 0x44d   :  { %v2994_v38 = vadd.f32 %v4586_v36, %v2899_v29 }
 0x44e   :  { %v2986_v34 = vpop.f32.mrf.mxu0 }
 0x44f   :  { %v2987_v35 = vadd.f32 %v2986_v34, %v2893_v11  ;;  %v3083_v19 = vadd.f32 %v4605_v33, %v2994_v38 }
 0x451   :  { %v3075_v49 = vadd.f32 %v3074_v59, %v2987_v35 }
 0x456   :  { %v4643_v17 = vpop.f32.mrf.mxu1 }
 0x458   :  { %v3262_v1 = vpop.f32.mrf.mxu1 }
 0x45d   :  { %v4624_v18 = vpop.f32.mrf.mxu0 }
 0x45e   :  { %v3184_v44 = vadd.f32 %v4624_v18, %v3083_v19 }
 0x45f   :  { %v3177_v50 = vpop.f32.mrf.mxu0 }
 0x460   :  { %v3269_v56 = vadd.f32 %v4643_v17, %v3184_v44  ;;  %v3178_v0 = vadd.f32 %v3177_v50, %v3075_v49 }
 0x462   :  { %4775 = vtanh.f32 %v3269_v56  ;;  %v3263_v28 = vadd.f32 %v3262_v1, %v3178_v0 }
 0x464   :  { %4777 = vtanh.f32 %v3263_v28 }
 0x46f   :  { %v4776_v12 = vpop.eup %4775 }
 0x470   :  { %v3282_v30 = vsel %vm599_vm1, %v4776_v12, 0 }
 0x471   :  { %v4778_v47 = vpop.eup %4777  ;;  %v5667_v9 = vand.u32 4294901760, %v3282_v30 }
 0x472   :  { %v3279_v62 = vsel %vm599_vm1, %v4778_v47, 0 }
 0x473   :  { %v3357_v4 = vand.u32 4294901760, %v3279_v62  ;;  %v3368_v23 = vsub.f32 %v3282_v30, %v5667_v9 }
 0x475   :  { %4679 = vmatprep.mubr.f32.mxu1 %v3357_v4  ;;  %v3358_v25 = vsub.f32 %v3279_v62, %v3357_v4  ;;  %v3369_v27 = vand.u32 4294901760, %v3368_v23 }
 0x476   :  { %4680 = vmatmul.mubr.f32.vlgmr.msra.gmra.mxu1 %v5667_v9 }
 0x477   :  { %4702 = vmatpush3.msra.mxu1 %v5545_v58  ;;  %v3359_v45 = vand.u32 4294901760, %v3358_v25  ;;  %v3370_v46 = vsub.f32 %v3368_v23, %v3369_v27 }
 0x478   :  { %4703 = vmatprep.subr.mxu1 %v5553_v5 }
 0x479   :  { %4704 = vmatpush3.msra.mxu1 %v5553_v5  ;;  %4717 = vmatprep.mubr.f32.mxu1 %v3359_v45  ;;  %v3360_v57 = vsub.f32 %v3358_v25, %v3359_v45  ;;  %v3371_v14 = vand.u32 4294901760, %v3370_v46 }
 0x47a   :  { %4705 = vmatprep.subr.mxu1 %v5566_v53 }
 0x47b   :  { %4706 = vmatpush3.msra.mxu1 %v5566_v53  ;;  %v3361_v63 = vand.u32 4294901760, %v3360_v57 }
 0x47c   :  { %4707 = vmatprep.subr.mxu1 %v5581_v42 }
 0x47d   :  { %4708 = vmatpush3.msra.mxu1 %v5581_v42  ;;  %4660 = vmatprep.mubr.f32.mxu0 %v3361_v63 }
 0x47e   :  { %4709 = vmatprep.subr.mxu1 %v5606_v2  ;;  %4661 = vmatmul.mubr.f32.vlgmr.msra.gmra.mxu0 %v3371_v14 }
 0x47f   :  { %4683 = vmatpush3.msra.mxu0 %v5551_v61  ;;  %4710 = vmatpush3.msra.mxu1 %v5606_v2 }
 0x480   :  { %4684 = vmatprep.subr.mxu0 %v5564_v52  ;;  %4698 = vmatprep.mubr.f32.mxu0 %v3358_v25 }
 0x481   :  { %4711 = vmatprep.subr.mxu1 %v5608_v3  ;;  %4685 = vmatpush3.msra.mxu0 %v5564_v52 }
 0x482   :  { %4712 = vmatpush3.msra.mxu1 %v5608_v3  ;;  %4686 = vmatprep.subr.mxu0 %v5579_v41 }
 0x483   :  { %4713 = vmatprep.subr.mxu1 %v5610_v10  ;;  %4687 = vmatpush3.msra.mxu0 %v5579_v41 }
 0x484   :  { %4714 = vmatpush3.msra.mxu1 %v5610_v10  ;;  %4688 = vmatprep.subr.mxu0 %v5594_v55 }
 0x485   :  { %4715 = vmatprep.subr.mxu1 %v5612_v40  ;;  %4689 = vmatpush3.msra.mxu0 %v5594_v55 }
 0x486   :  { %4716 = vmatpush3.msra.mxu1 %v5612_v40  ;;  %4690 = vmatprep.subr.mxu0 %v5621_v32 }
 0x487   :  { %4718 = vmatmul.mubr.f32.vlgmr.msra.gmra.mxu1 %v3369_v27  ;;  %4739 = vmatprep.subr.mxu1 %v5545_v58 }
 0x488   :  { %4691 = vmatpush3.msra.mxu0 %v5621_v32  ;;  %4740 = vmatpush3.msra.mxu1 %v5545_v58  ;;  %v3276_v58 = vsub.s32 4, %v5026_v24 }
 0x489   :  { %4755 = vmatprep.mubr.f32.mxu1 %v3357_v4  ;;  %4692 = vmatprep.subr.mxu0 %v5624_v15 }
 0x48a   :  { %4741 = vmatprep.subr.mxu1 %v5553_v5  ;;  %4693 = vmatpush3.msra.mxu0 %v5624_v15 }
 0x48b   :  { %4742 = vmatpush3.msra.mxu1 %v5553_v5  ;;  %4694 = vmatprep.subr.mxu0 %v5627_v26 }
 0x48c   :  { %4743 = vmatprep.subr.mxu1 %v5566_v53  ;;  %4695 = vmatpush3.msra.mxu0 %v5627_v26 }
 0x48d   :  { %4744 = vmatpush3.msra.mxu1 %v5566_v53  ;;  %4696 = vmatprep.subr.mxu0 %v5630_v16 }
 0x48e   :  { %4745 = vmatprep.subr.mxu1 %v5581_v42  ;;  %4697 = vmatpush3.msra.mxu0 %v5630_v16 }
 0x48f   :  { %4746 = vmatpush3.msra.mxu1 %v5581_v42  ;;  %4699 = vmatmul.mubr.f32.vlgmr.msra.gmra.mxu0 %v3368_v23 }
 0x490   :  { %4720 = vmatprep.subr.mxu0 %v5561_v22  ;;  %4747 = vmatprep.subr.mxu1 %v5606_v2 }
 0x491   :  { %4721 = vmatpush3.msra.mxu0 %v5561_v22  ;;  %4736 = vmatprep.mubr.f32.mxu0 %v3357_v4  ;;  %v3277_v22 = vrot.slane %v5469_v37, %v3276_v58 }
 0x492   :  { %4748 = vmatpush3.msra.mxu1 %v5606_v2  ;;  %4722 = vmatprep.subr.mxu0 %v5576_v39 }
 0x493   :  { %4749 = vmatprep.subr.mxu1 %v5608_v3  ;;  %4723 = vmatpush3.msra.mxu0 %v5576_v39 }
 0x494   :  { %4750 = vmatpush3.msra.mxu1 %v5608_v3  ;;  %4724 = vmatprep.subr.mxu0 %v5591_v51 }
 0x495   :  { %4751 = vmatprep.subr.mxu1 %v5610_v10  ;;  %4725 = vmatpush3.msra.mxu0 %v5591_v51 }
 0x496   :  { %4752 = vmatpush3.msra.mxu1 %v5610_v10  ;;  %4726 = vmatprep.subr.mxu0 %v5618_v43 }
 0x497   :  { %4753 = vmatprep.subr.mxu1 %v5612_v40  ;;  %4727 = vmatpush3.msra.mxu0 %v5618_v43 }
 0x498   :  { %4754 = vmatpush3.msra.mxu1 %v5612_v40  ;;  %4728 = vmatprep.subr.mxu0 %v5636_v60 }
 0x499   :  { %4756 = vmatmul.mubr.f32.vlgmr.msra.gmra.mxu1 %v5667_v9  ;;  %4729 = vmatpush3.msra.mxu0 %v5636_v60 }
 0x49a   :  { %4730 = vmatprep.subr.mxu0 %v5639_v20 }
 0x49b   :  { %4731 = vmatpush3.msra.mxu0 %v5639_v20 }
 0x49c   :  { %4732 = vmatprep.subr.mxu0 %v5642_v21 }
 0x49d   :  { %4733 = vmatpush3.msra.mxu0 %v5642_v21 }
 0x49e   :  { %4734 = vmatprep.subr.mxu0 %v5645_v54 }
 0x49f   :  { %4735 = vmatpush3.msra.mxu0 %v5645_v54 }
 0x4a0   :  { %4737 = vmatmul.mubr.f32.vlgmr.msra.gmra.mxu0 %v5667_v9 }
 0x536   :  { %v4681_v61 = vpop.f32.mrf.mxu1 }
 0x538   :  { %v3484_v39 = vpop.f32.mrf.mxu1 }
 0x53e   :  { %v4662_v5 = vpop.f32.mrf.mxu0 }
 0x53f   :  { %v3374_v40 = vadd.f32 %v4662_v5, %v3277_v22 }
 0x540   :  { %v3363_v52 = vpop.f32.mrf.mxu0 }
 0x541   :  { %v3364_v53 = vadd.f32 %v3363_v52, %v3277_v22  ;;  %v3491_v43 = vadd.f32 %v4681_v61, %v3374_v40 }
 0x543   :  { %v3485_v41 = vadd.f32 %v3484_v39, %v3364_v53 }
 0x547   :  { %v4719_v42 = vpop.f32.mrf.mxu1 }
 0x549   :  { %v3666_v3 = vpop.f32.mrf.mxu1 }
 0x54f   :  { %v4700_v51 = vpop.f32.mrf.mxu0 }
 0x550   :  { %v3586_v32 = vadd.f32 %v4700_v51, %v3491_v43 }
 0x551   :  { %v3578_v55 = vpop.f32.mrf.mxu0 }
 0x552   :  { %v3579_v2 = vadd.f32 %v3578_v55, %v3485_v41  ;;  %v3675_v15 = vadd.f32 %v4719_v42, %v3586_v32 }
 0x554   :  { %v3667_v10 = vadd.f32 %v3666_v3, %v3579_v2 }
 0x559   :  { %v4757_v16 = vpop.f32.mrf.mxu1 }
 0x55b   :  { %v3854_v21 = vpop.f32.mrf.mxu1 }
 0x560   :  { %v4738_v26 = vpop.f32.mrf.mxu0 }
 0x561   :  { %v3776_v24 = vadd.f32 %v4738_v26, %v3675_v15 }
 0x562   :  { %v3769_v37 = vpop.f32.mrf.mxu0 }
 0x563   :  { %v3861_v60 = vadd.f32 %v4757_v16, %v3776_v24  ;;  %v3770_v20 = vadd.f32 %v3769_v37, %v3667_v10 }
 0x565   :  { %3865 = vrot.lane.b32.xlu1 %v3861_v60, %s4784_s2  ;;  %v3855_v54 = vadd.f32 %v3854_v21, %v3770_v20 }
 0x5d7   :  { %v3866_v6 = vpop.permute.xlu1 %3865 }
 0x5d8   :  { %v3869_v7 = vsel %vm3868_vm4, %v3855_v54, %v3866_v6 }
 0x5d9   :  { %3871 = vst.msk [vmem:[%s5744_s3] sm:$0xff] %vm3870_vm5, %v3869_v7 }

</bundles_post_ra>
